<compile_context>
chip_gen: v7x
topology: tpu7x:2x2x1
jax: 0.10.0
libtpu: 0.0.40
codegen_flags: <defaults>
</compile_context>

<pallas_src>
import functools

import numpy as np
import jax
import jax.numpy as jnp
from jax import lax
from jax.experimental import pallas as pl
from jax.experimental.pallas import tpu as pltpu

V = 41          # vocab size  (nn.Embedding(41, 64, padding_idx=0))
VPAD = 48       # vocab padded to a sublane multiple for the one-hot matmul
H = 64          # embedding dim == hidden dim
G = 4 * H       # gates per direction, reordered offline to [i, f, o, g]


# ----------------------------------------------------------------------------
# Pallas kernel: masked bidirectional-LSTM "last output" + fc, batch-tiled.
# ----------------------------------------------------------------------------
def _smiles_lstm_kernel(tok_ref, len_ref, tab_ref, whh_ref, wfc_ref, bfc_ref,
                        out_ref, pg_ref, *, seq_len, tb):
    L, TB = seq_len, tb
    lens = len_ref[...]                          # (TB, 1) int32 sequence lengths
    whh = whh_ref[...]                           # (64, 256) fwd hidden -> gates

    # ---- embedding + input projection, hoisted out of the recurrence --------
    # one-hot(tokens) @ (emb @ W_ih_f.T + b_ih_f + b_hh_f): one MXU matmul
    # produces the gate pre-activations of ALL L steps into a VMEM scratch.
    tok = tok_ref[0]                             # (L*TB, 1) int32, row = t*TB + b
    onehot = (tok == lax.broadcasted_iota(jnp.int32, (L * TB, VPAD), 1)
              ).astype(jnp.float32)              # (L*TB, 48)
    pg_ref[...] = jnp.dot(onehot, tab_ref[:, 0:G],
                          preferred_element_type=jnp.float32)    # (L*TB, 256)

    def sigmoid(v):                              # single EUP op (exact tanh form)
        return 0.5 * jnp.tanh(0.5 * v) + 0.5

    def load_pre(t):                             # pre-gates of step t: (TB, 256)
        if isinstance(t, int):
            return pg_ref[pl.ds(t * TB, TB), :]
        return pg_ref[pl.ds(pl.multiple_of(t * TB, TB), TB), :]

    # ---- forward direction: masked recurrence == packed forward LSTM --------
    # Only h @ W_hh remains on the serial per-step critical path.
    def step(t, carry):
        h, c = carry
        gates = load_pre(t) + jnp.dot(h, whh, preferred_element_type=jnp.float32)
        s_if = sigmoid(gates[:, 0:2 * H])        # i|f: one lane-dense (TB,128) slice
        o = sigmoid(gates[:, 2 * H:3 * H])       # (TB, 64)
        g = jnp.tanh(gates[:, 3 * H:4 * H])      # (TB, 64)
        c_new = s_if[:, H:2 * H] * c + s_if[:, 0:H] * g
        h_new = o * jnp.tanh(c_new)
        valid = lens > t                         # (TB,1): freeze state past length
        return jnp.where(valid, h_new, h), jnp.where(valid, c_new, c)

    carry = (jnp.zeros((TB, H), jnp.float32), jnp.zeros((TB, H), jnp.float32))
    if L <= 32:
        for t in range(L):                       # full static unroll (L is static)
            carry = step(t, carry)
    else:
        def step2(tt, cy):                       # manual 2x unroll, plain fori_loop
            return step(2 * tt + 1, step(2 * tt, cy))
        carry = lax.fori_loop(0, L // 2, step2, carry)
        if L % 2:
            carry = step(L - 1, carry)
    h_fwd = carry[0]

    # ---- reverse direction: only its first step (t = L-1, zero init state)
    # reaches out[:, -1, :]; W_hh_b never contributes. ------------------------
    oh_last = onehot[(L - 1) * TB:L * TB, :]     # (TB, 48)
    gb = jnp.dot(oh_last, tab_ref[:, G:2 * G], preferred_element_type=jnp.float32)
    i_b = sigmoid(gb[:, 0:H])
    o_b = sigmoid(gb[:, 2 * H:3 * H])
    g_b = jnp.tanh(gb[:, 3 * H:4 * H])
    h_bwd = o_b * jnp.tanh(i_b * g_b)            # c_prev = 0 -> forget gate unused

    # pad_packed_sequence zero-fills rows whose sequence ends before t = L-1.
    full = lens >= L                             # (TB, 1)
    hf = jnp.where(full, h_fwd, 0.0)
    hb = jnp.where(full, h_bwd, 0.0)

    # fc as two matmuls against the fwd/bwd halves of wfc (no lane concatenate);
    # columns 64:128 of wfc / bfc are zero so the store stays lane-dense.
    out_ref[...] = (
        jnp.dot(hf, wfc_ref[0:H, :], preferred_element_type=jnp.float32)
        + jnp.dot(hb, wfc_ref[H:2 * H, :], preferred_element_type=jnp.float32)
        + bfc_ref[0:1, :])


# ----------------------------------------------------------------------------
# Wrapper: batch tiling, operand packing, pallas_call.
# ----------------------------------------------------------------------------
def _round_up(x, m):
    return (x + m - 1) // m * m


def _pick_tb(batch, seq_len):
    # Vreg-aware cap: h/c carries are (TB,64); TB<=128 keeps the loop state
    # resident.  Also cap so the (L*TB,256) f32 pre-gate scratch stays <= ~8 MiB.
    # TODO(synk): very long sequences would need time-chunked pre-gate compute.
    b8 = _round_up(max(int(batch), 1), 8)
    scr_cap = max(8, ((8 << 20) // (seq_len * G * 4)) // 8 * 8)
    return int(min(b8, 128, scr_cap))


def _two_tensorcores():
    # v7x-class chips have 2 TensorCores: keep the 'parallel' tile count even.
    try:
        kind = jax.devices()[0].device_kind.lower()
    except Exception:
        return False
    return "v7" in kind or "7x" in kind


def smilesnet_forward(packed, tokens, lengths):
    """tokens: (B, L) int32, lengths: (B,) int32  ->  (B, 64) float32."""
    B, L = tokens.shape
    TB = _pick_tb(B, L)
    B_pad = _round_up(B, TB)
    n_tiles = B_pad // TB
    if n_tiles > 1 and n_tiles % 2 == 1 and _two_tensorcores():
        B_pad += TB
        n_tiles += 1

    tok = tokens.astype(jnp.int32)
    lens = lengths.astype(jnp.int32)
    if B_pad != B:
        tok = jnp.pad(tok, ((0, B_pad - B), (0, 0)))
        lens = jnp.pad(lens, (0, B_pad - B))          # padded rows: length 0
    # Per-tile, time-major flat token layout: row t*TB + b <-> (batch g*TB+b, t).
    tok = tok.reshape(n_tiles, TB, L).transpose(0, 2, 1).reshape(n_tiles, L * TB, 1)
    len_col = lens.reshape(B_pad, 1)

    pg_bytes = L * TB * G * 4
    vmem_limit = int(min(48 << 20, max(16 << 20, 2 * pg_bytes + (8 << 20))))

    kernel = functools.partial(_smiles_lstm_kernel, seq_len=L, tb=TB)

    # TODO(synk): assumes the batch is padded to its max length (max(s) == L),
    # matching the usual collate; pad_packed_sequence then has T_max == L.
    out = pl.pallas_call(
        kernel,
        out_shape=jax.ShapeDtypeStruct((B_pad, 2 * H), jnp.float32),
        grid_spec=pltpu.PrefetchScalarGridSpec(
            num_scalar_prefetch=0,
            grid=(n_tiles,),
            in_specs=[
                pl.BlockSpec((1, L * TB, 1), lambda g: (g, 0, 0)),   # tokens
                pl.BlockSpec((TB, 1), lambda g: (g, 0)),             # lengths
                pl.BlockSpec((VPAD, 2 * G), lambda g: (0, 0)),       # emb@W_ih (+bias) table
                pl.BlockSpec((H, G), lambda g: (0, 0)),              # W_hh forward
                pl.BlockSpec((2 * H, 2 * H), lambda g: (0, 0)),      # fc weight (padded)
                pl.BlockSpec((8, 2 * H), lambda g: (0, 0)),          # fc bias (padded)
            ],
            out_specs=pl.BlockSpec((TB, 2 * H), lambda g: (g, 0)),
            scratch_shapes=[pltpu.VMEM((L * TB, G), jnp.float32)],   # pre-gates
        ),
        compiler_params=pltpu.CompilerParams(
            dimension_semantics=("parallel",),
            vmem_limit_bytes=vmem_limit,
        ),
    )(tok, len_col, packed["table"], packed["w_hh"], packed["w_fc"], packed["b_fc"])

    return out[:B, :H]


# ----------------------------------------------------------------------------
# Parameters (PyTorch layout) + offline packing into kernel slabs.
# ----------------------------------------------------------------------------
def init_params(key):
    ks = jax.random.split(key, 11)
    nrm = lambda k, shape, s: jax.random.normal(k, shape, jnp.float32) * s
    emb = nrm(ks[0], (V, H), 0.2).at[0].set(0.0)             # padding_idx=0
    return {
        "emb": emb,
        # PyTorch layout: weight_ih (4H, in), weight_hh (4H, H); gate order i,f,g,o
        "w_ih_f": nrm(ks[1], (G, H), 0.15), "w_hh_f": nrm(ks[2], (G, H), 0.15),
        "b_ih_f": nrm(ks[3], (G,), 0.05),   "b_hh_f": nrm(ks[4], (G,), 0.05),
        "w_ih_b": nrm(ks[5], (G, H), 0.15), "w_hh_b": nrm(ks[6], (G, H), 0.15),
        "b_ih_b": nrm(ks[7], (G,), 0.05),   "b_hh_b": nrm(ks[8], (G,), 0.05),
        "w_fc": nrm(ks[9], (H, 2 * H), 0.15), "b_fc": nrm(ks[10], (H,), 0.05),
    }


def _reorder_rows(w):
    """Gate reorder along axis 0: PyTorch [i,f,g,o] -> kernel [i,f,o,g]."""
    i, f, g, o = jnp.split(w, 4, axis=0)
    return jnp.concatenate([i, f, o, g], axis=0)


def pack_params(p):
    """Offline packing: premultiplied embedding/W_ih table, W_hh, padded fc."""
    w_ih_f = _reorder_rows(p["w_ih_f"])                      # (256, 64)
    w_ih_b = _reorder_rows(p["w_ih_b"])
    w_hh_f = _reorder_rows(p["w_hh_f"])
    b_f = _reorder_rows((p["b_ih_f"] + p["b_hh_f"])[:, None])[:, 0]   # (256,)
    b_b = _reorder_rows((p["b_ih_b"] + p["b_hh_b"])[:, None])[:, 0]
    tab_f = p["emb"] @ w_ih_f.T + b_f[None, :]               # (41, 256)
    tab_b = p["emb"] @ w_ih_b.T + b_b[None, :]               # (41, 256)
    table = jnp.zeros((VPAD, 2 * G), jnp.float32)
    table = table.at[:V, :G].set(tab_f).at[:V, G:].set(tab_b)
    w_hh = w_hh_f.T.astype(jnp.float32)                      # (64, 256)
    w_fc = jnp.zeros((2 * H, 2 * H), jnp.float32).at[:, :H].set(p["w_fc"].T)
    b_fc = jnp.zeros((8, 2 * H), jnp.float32).at[0, :H].set(p["b_fc"])
    return {"table": table, "w_hh": w_hh, "w_fc": w_fc, "b_fc": b_fc}


# ----------------------------------------------------------------------------
# Plain-JAX reference: FULL bidirectional masked LSTM (== packed LSTM),
# pad_packed zero-fill, out[:, -1, :], fc.
# ----------------------------------------------------------------------------
def smilesnet_reference(p, tokens, lengths):
    x = jnp.take(p["emb"], tokens, axis=0)                   # (B, L, H)
    B, L, _ = x.shape
    lengths = lengths.astype(jnp.int32)
    zero = jnp.zeros((B, H), jnp.float32)

    def cell(x_t, h, c, w_ih, w_hh, b_ih, b_hh):
        gates = x_t @ w_ih.T + b_ih + h @ w_hh.T + b_hh
        i, f, g, o = jnp.split(gates, 4, axis=-1)
        c_new = jax.nn.sigmoid(f) * c + jax.nn.sigmoid(i) * jnp.tanh(g)
        h_new = jax.nn.sigmoid(o) * jnp.tanh(c_new)
        return h_new, c_new

    def run_direction(ts, w_ih, w_hh, b_ih, b_hh):
        def scan_fn(carry, t):
            h, c = carry
            h_new, c_new = cell(x[:, t], h, c, w_ih, w_hh, b_ih, b_hh)
            valid = (lengths > t)[:, None]
            h = jnp.where(valid, h_new, h)
            c = jnp.where(valid, c_new, c)
            return (h, c), jnp.where(valid, h, 0.0)          # padded positions -> 0
        _, outs = lax.scan(scan_fn, (zero, zero), ts)
        return outs                                          # (L, B, H) in ts order

    out_f = run_direction(jnp.arange(L),
                          p["w_ih_f"], p["w_hh_f"], p["b_ih_f"], p["b_hh_f"])
    out_b = run_direction(jnp.arange(L - 1, -1, -1),
                          p["w_ih_b"], p["w_hh_b"], p["b_ih_b"], p["b_hh_b"])[::-1]
    out = jnp.concatenate([out_f, out_b], axis=-1)           # (L, B, 2H) time-major
    # out[:, -1, :] with batch_first=True == out[L-1] here (max(lengths) == L)
    return out[L - 1] @ p["w_fc"].T + p["b_fc"]


# ----------------------------------------------------------------------------
if __name__ == "__main__":
    B, L = 2, 8
    key = jax.random.PRNGKey(0)
    k_tok, k_prm = jax.random.split(key)

    tokens = jax.random.randint(k_tok, (B, L), 1, V, dtype=jnp.int32)
    lengths = jnp.array([5, L], dtype=jnp.int32)             # max(lengths) == L
    # positions past each sequence length carry the padding token id 0
    tokens = jnp.where(jnp.arange(L)[None, :] < lengths[:, None], tokens, 0)

    params = init_params(k_prm)
    packed = pack_params(params)

    y = smilesnet_forward(packed, tokens, lengths)
    y = jax.block_until_ready(y)

    ref = smilesnet_reference(params, tokens, lengths)
    np.testing.assert_allclose(np.asarray(y), np.asarray(ref), rtol=1e-4, atol=1e-4)
    assert y.shape == (B, H) and np.all(np.isfinite(np.asarray(y)))
    print("KERNEL_OK")
</pallas_src>

<mosaic_0001>
module attributes {stable_mosaic.version = 11 : i64} {
  func.func @_smiles_lstm_kernel(%arg0: i32, %arg1: memref<1x64x1xi32, #tpu.memory_space<vmem>>, %arg2: memref<8x1xi32, #tpu.memory_space<vmem>>, %arg3: memref<48x512xf32, #tpu.memory_space<vmem>>, %arg4: memref<64x256xf32, #tpu.memory_space<vmem>>, %arg5: memref<128x128xf32, #tpu.memory_space<vmem>>, %arg6: memref<8x128xf32, #tpu.memory_space<vmem>>, %arg7: memref<8x128xf32, #tpu.memory_space<vmem>>, %arg8: memref<64x256xf32, #tpu.memory_space<vmem>>) attributes {dimension_semantics = [#tpu.dimension_semantics<parallel>], iteration_bounds = array<i64: 1>, scalar_prefetch = 0 : i64, scratch_operands = 1 : i64, tpu.core_type = #tpu.core_type<tc>, window_params = [{transform_indices = @transform_0, window_bounds = array<i64: 1, 64, 1>}, {transform_indices = @transform_1, window_bounds = array<i64: 8, 1>}, {pipeline_mode = #tpu.pipeline_mode<synchronous>, transform_indices = @transform_2, window_bounds = array<i64: 48, 512>}, {pipeline_mode = #tpu.pipeline_mode<synchronous>, transform_indices = @transform_3, window_bounds = array<i64: 64, 256>}, {pipeline_mode = #tpu.pipeline_mode<synchronous>, transform_indices = @transform_4, window_bounds = array<i64: 128, 128>}, {pipeline_mode = #tpu.pipeline_mode<synchronous>, transform_indices = @transform_5, window_bounds = array<i64: 8, 128>}, {transform_indices = @transform_6, window_bounds = array<i64: 8, 128>}]} {
    %c0 = arith.constant 0 : index
    %c0_0 = arith.constant 0 : index
    %0 = vector.load %arg2[%c0, %c0_0] : memref<8x1xi32, #tpu.memory_space<vmem>>, vector<8x1xi32>
    %c0_1 = arith.constant 0 : index
    %c0_2 = arith.constant 0 : index
    %1 = vector.load %arg4[%c0_1, %c0_2] : memref<64x256xf32, #tpu.memory_space<vmem>>, vector<64x256xf32>
    %c0_3 = arith.constant 0 : index
    %c0_4 = arith.constant 0 : index
    %c0_5 = arith.constant 0 : index
    %2 = vector.load %arg1[%c0_3, %c0_4, %c0_5] : memref<1x64x1xi32, #tpu.memory_space<vmem>>, vector<1x64x1xi32>
    %3 = vector.shape_cast %2 : vector<1x64x1xi32> to vector<64x1xi32>
    %4 = tpu.iota {dimensions = array<i32: 1>} : vector<64x48xi32>
    %5 = vector.broadcast %3 : vector<64x1xi32> to vector<64x48xi32>
    %6 = arith.cmpi eq, %5, %4 : vector<64x48xi32>
    %7 = arith.extui %6 : vector<64x48xi1> to vector<64x48xi32>
    %8 = arith.sitofp %7 : vector<64x48xi32> to vector<64x48xf32>
    %c0_6 = arith.constant 0 : index
    %c0_7 = arith.constant 0 : index
    %9 = vector.load %arg3[%c0_6, %c0_7] : memref<48x512xf32, #tpu.memory_space<vmem>>, vector<48x256xf32>
    %cst = arith.constant dense<0.000000e+00> : vector<64x256xf32>
    %10 = tpu.matmul %8, %9, %cst {dimension_numbers = #tpu.dot_dimension_numbers<[1], [0], [0], [1], [0, 0, 1, 1], [], []>} : vector<64x48xf32>, vector<48x256xf32>, vector<64x256xf32> -> vector<64x256xf32>
    %c0_8 = arith.constant 0 : index
    %c0_9 = arith.constant 0 : index
    %11 = vector.load %arg8[%c0_8, %c0_9] : memref<64x256xf32, #tpu.memory_space<vmem>>, vector<64x256xf32>
    tpu.vector_store %arg8[%c0_8, %c0_9], %10 {strides = array<i32>} : memref<64x256xf32, #tpu.memory_space<vmem>>, vector<64x256xf32>,
    %cst_10 = arith.constant 0.000000e+00 : f32
    %12 = vector.broadcast %cst_10 : f32 to vector<8x64xf32>
    %cst_11 = arith.constant 0.000000e+00 : f32
    %13 = vector.broadcast %cst_11 : f32 to vector<8x64xf32>
    %c0_12 = arith.constant 0 : index
    %c0_13 = arith.constant 0 : index
    %14 = vector.load %arg8[%c0_12, %c0_13] : memref<64x256xf32, #tpu.memory_space<vmem>>, vector<8x256xf32>
    %cst_14 = arith.constant dense<0.000000e+00> : vector<8x256xf32>
    %15 = tpu.matmul %12, %1, %cst_14 {dimension_numbers = #tpu.dot_dimension_numbers<[1], [0], [0], [1], [0, 0, 1, 1], [], []>} : vector<8x64xf32>, vector<64x256xf32>, vector<8x256xf32> -> vector<8x256xf32>
    %16 = arith.addf %14, %15 : vector<8x256xf32>
    %17 = vector.extract_strided_slice %16 {offsets = [0, 0], sizes = [8, 128], strides = [1, 1]} : vector<8x256xf32> to vector<8x128xf32>
    %cst_15 = arith.constant 5.000000e-01 : f32
    %18 = vector.broadcast %cst_15 : f32 to vector<8x128xf32>
    %19 = arith.mulf %18, %17 : vector<8x128xf32>
    %20 = math.tanh %19 : vector<8x128xf32>
    %cst_16 = arith.constant 5.000000e-01 : f32
    %21 = vector.broadcast %cst_16 : f32 to vector<8x128xf32>
    %22 = arith.mulf %21, %20 : vector<8x128xf32>
    %cst_17 = arith.constant 5.000000e-01 : f32
    %23 = vector.broadcast %cst_17 : f32 to vector<8x128xf32>
    %24 = arith.addf %22, %23 : vector<8x128xf32>
    %25 = vector.extract_strided_slice %16 {offsets = [0, 128], sizes = [8, 64], strides = [1, 1]} : vector<8x256xf32> to vector<8x64xf32>
    %cst_18 = arith.constant 5.000000e-01 : f32
    %26 = vector.broadcast %cst_18 : f32 to vector<8x64xf32>
    %27 = arith.mulf %26, %25 : vector<8x64xf32>
    %28 = math.tanh %27 : vector<8x64xf32>
    %cst_19 = arith.constant 5.000000e-01 : f32
    %29 = vector.broadcast %cst_19 : f32 to vector<8x64xf32>
    %30 = arith.mulf %29, %28 : vector<8x64xf32>
    %cst_20 = arith.constant 5.000000e-01 : f32
    %31 = vector.broadcast %cst_20 : f32 to vector<8x64xf32>
    %32 = arith.addf %30, %31 : vector<8x64xf32>
    %33 = vector.extract_strided_slice %16 {offsets = [0, 192], sizes = [8, 64], strides = [1, 1]} : vector<8x256xf32> to vector<8x64xf32>
    %34 = math.tanh %33 : vector<8x64xf32>
    %35 = vector.extract_strided_slice %24 {offsets = [0, 64], sizes = [8, 64], strides = [1, 1]} : vector<8x128xf32> to vector<8x64xf32>
    %36 = arith.mulf %35, %13 : vector<8x64xf32>
    %37 = vector.extract_strided_slice %24 {offsets = [0, 0], sizes = [8, 64], strides = [1, 1]} : vector<8x128xf32> to vector<8x64xf32>
    %38 = arith.mulf %37, %34 : vector<8x64xf32>
    %39 = arith.addf %36, %38 : vector<8x64xf32>
    %40 = math.tanh %39 : vector<8x64xf32>
    %41 = arith.mulf %32, %40 : vector<8x64xf32>
    %c0_i32 = arith.constant 0 : i32
    %42 = vector.broadcast %c0_i32 : i32 to vector<8x1xi32>
    %43 = arith.cmpi sgt, %0, %42 : vector<8x1xi32>
    %44 = vector.shape_cast %43 : vector<8x1xi1> to vector<8x1xi1>
    %45 = vector.broadcast %44 : vector<8x1xi1> to vector<8x64xi1>
    %46 = arith.select %45, %41, %12 : vector<8x64xi1>, vector<8x64xf32>
    %47 = vector.shape_cast %43 : vector<8x1xi1> to vector<8x1xi1>
    %48 = vector.broadcast %47 : vector<8x1xi1> to vector<8x64xi1>
    %49 = arith.select %48, %39, %13 : vector<8x64xi1>, vector<8x64xf32>
    %c8 = arith.constant 8 : index
    %c0_21 = arith.constant 0 : index
    %50 = vector.load %arg8[%c8, %c0_21] : memref<64x256xf32, #tpu.memory_space<vmem>>, vector<8x256xf32>
    %cst_22 = arith.constant dense<0.000000e+00> : vector<8x256xf32>
    %51 = tpu.matmul %46, %1, %cst_22 {dimension_numbers = #tpu.dot_dimension_numbers<[1], [0], [0], [1], [0, 0, 1, 1], [], []>} : vector<8x64xf32>, vector<64x256xf32>, vector<8x256xf32> -> vector<8x256xf32>
    %52 = arith.addf %50, %51 : vector<8x256xf32>
    %53 = vector.extract_strided_slice %52 {offsets = [0, 0], sizes = [8, 128], strides = [1, 1]} : vector<8x256xf32> to vector<8x128xf32>
    %cst_23 = arith.constant 5.000000e-01 : f32
    %54 = vector.broadcast %cst_23 : f32 to vector<8x128xf32>
    %55 = arith.mulf %54, %53 : vector<8x128xf32>
    %56 = math.tanh %55 : vector<8x128xf32>
    %cst_24 = arith.constant 5.000000e-01 : f32
    %57 = vector.broadcast %cst_24 : f32 to vector<8x128xf32>
    %58 = arith.mulf %57, %56 : vector<8x128xf32>
    %cst_25 = arith.constant 5.000000e-01 : f32
    %59 = vector.broadcast %cst_25 : f32 to vector<8x128xf32>
    %60 = arith.addf %58, %59 : vector<8x128xf32>
    %61 = vector.extract_strided_slice %52 {offsets = [0, 128], sizes = [8, 64], strides = [1, 1]} : vector<8x256xf32> to vector<8x64xf32>
    %cst_26 = arith.constant 5.000000e-01 : f32
    %62 = vector.broadcast %cst_26 : f32 to vector<8x64xf32>
    %63 = arith.mulf %62, %61 : vector<8x64xf32>
    %64 = math.tanh %63 : vector<8x64xf32>
    %cst_27 = arith.constant 5.000000e-01 : f32
    %65 = vector.broadcast %cst_27 : f32 to vector<8x64xf32>
    %66 = arith.mulf %65, %64 : vector<8x64xf32>
    %cst_28 = arith.constant 5.000000e-01 : f32
    %67 = vector.broadcast %cst_28 : f32 to vector<8x64xf32>
    %68 = arith.addf %66, %67 : vector<8x64xf32>
    %69 = vector.extract_strided_slice %52 {offsets = [0, 192], sizes = [8, 64], strides = [1, 1]} : vector<8x256xf32> to vector<8x64xf32>
    %70 = math.tanh %69 : vector<8x64xf32>
    %71 = vector.extract_strided_slice %60 {offsets = [0, 64], sizes = [8, 64], strides = [1, 1]} : vector<8x128xf32> to vector<8x64xf32>
    %72 = arith.mulf %71, %49 : vector<8x64xf32>
    %73 = vector.extract_strided_slice %60 {offsets = [0, 0], sizes = [8, 64], strides = [1, 1]} : vector<8x128xf32> to vector<8x64xf32>
    %74 = arith.mulf %73, %70 : vector<8x64xf32>
    %75 = arith.addf %72, %74 : vector<8x64xf32>
    %76 = math.tanh %75 : vector<8x64xf32>
    %77 = arith.mulf %68, %76 : vector<8x64xf32>
    %c1_i32 = arith.constant 1 : i32
    %78 = vector.broadcast %c1_i32 : i32 to vector<8x1xi32>
    %79 = arith.cmpi sgt, %0, %78 : vector<8x1xi32>
    %80 = vector.shape_cast %79 : vector<8x1xi1> to vector<8x1xi1>
    %81 = vector.broadcast %80 : vector<8x1xi1> to vector<8x64xi1>
    %82 = arith.select %81, %77, %46 : vector<8x64xi1>, vector<8x64xf32>
    %83 = vector.shape_cast %79 : vector<8x1xi1> to vector<8x1xi1>
    %84 = vector.broadcast %83 : vector<8x1xi1> to vector<8x64xi1>
    %85 = arith.select %84, %75, %49 : vector<8x64xi1>, vector<8x64xf32>
    %c16 = arith.constant 16 : index
    %c0_29 = arith.constant 0 : index
    %86 = vector.load %arg8[%c16, %c0_29] : memref<64x256xf32, #tpu.memory_space<vmem>>, vector<8x256xf32>
    %cst_30 = arith.constant dense<0.000000e+00> : vector<8x256xf32>
    %87 = tpu.matmul %82, %1, %cst_30 {dimension_numbers = #tpu.dot_dimension_numbers<[1], [0], [0], [1], [0, 0, 1, 1], [], []>} : vector<8x64xf32>, vector<64x256xf32>, vector<8x256xf32> -> vector<8x256xf32>
    %88 = arith.addf %86, %87 : vector<8x256xf32>
    %89 = vector.extract_strided_slice %88 {offsets = [0, 0], sizes = [8, 128], strides = [1, 1]} : vector<8x256xf32> to vector<8x128xf32>
    %cst_31 = arith.constant 5.000000e-01 : f32
    %90 = vector.broadcast %cst_31 : f32 to vector<8x128xf32>
    %91 = arith.mulf %90, %89 : vector<8x128xf32>
    %92 = math.tanh %91 : vector<8x128xf32>
    %cst_32 = arith.constant 5.000000e-01 : f32
    %93 = vector.broadcast %cst_32 : f32 to vector<8x128xf32>
    %94 = arith.mulf %93, %92 : vector<8x128xf32>
    %cst_33 = arith.constant 5.000000e-01 : f32
    %95 = vector.broadcast %cst_33 : f32 to vector<8x128xf32>
    %96 = arith.addf %94, %95 : vector<8x128xf32>
    %97 = vector.extract_strided_slice %88 {offsets = [0, 128], sizes = [8, 64], strides = [1, 1]} : vector<8x256xf32> to vector<8x64xf32>
    %cst_34 = arith.constant 5.000000e-01 : f32
    %98 = vector.broadcast %cst_34 : f32 to vector<8x64xf32>
    %99 = arith.mulf %98, %97 : vector<8x64xf32>
    %100 = math.tanh %99 : vector<8x64xf32>
    %cst_35 = arith.constant 5.000000e-01 : f32
    %101 = vector.broadcast %cst_35 : f32 to vector<8x64xf32>
    %102 = arith.mulf %101, %100 : vector<8x64xf32>
    %cst_36 = arith.constant 5.000000e-01 : f32
    %103 = vector.broadcast %cst_36 : f32 to vector<8x64xf32>
    %104 = arith.addf %102, %103 : vector<8x64xf32>
    %105 = vector.extract_strided_slice %88 {offsets = [0, 192], sizes = [8, 64], strides = [1, 1]} : vector<8x256xf32> to vector<8x64xf32>
    %106 = math.tanh %105 : vector<8x64xf32>
    %107 = vector.extract_strided_slice %96 {offsets = [0, 64], sizes = [8, 64], strides = [1, 1]} : vector<8x128xf32> to vector<8x64xf32>
    %108 = arith.mulf %107, %85 : vector<8x64xf32>
    %109 = vector.extract_strided_slice %96 {offsets = [0, 0], sizes = [8, 64], strides = [1, 1]} : vector<8x128xf32> to vector<8x64xf32>
    %110 = arith.mulf %109, %106 : vector<8x64xf32>
    %111 = arith.addf %108, %110 : vector<8x64xf32>
    %112 = math.tanh %111 : vector<8x64xf32>
    %113 = arith.mulf %104, %112 : vector<8x64xf32>
    %c2_i32 = arith.constant 2 : i32
    %114 = vector.broadcast %c2_i32 : i32 to vector<8x1xi32>
    %115 = arith.cmpi sgt, %0, %114 : vector<8x1xi32>
    %116 = vector.shape_cast %115 : vector<8x1xi1> to vector<8x1xi1>
    %117 = vector.broadcast %116 : vector<8x1xi1> to vector<8x64xi1>
    %118 = arith.select %117, %113, %82 : vector<8x64xi1>, vector<8x64xf32>
    %119 = vector.shape_cast %115 : vector<8x1xi1> to vector<8x1xi1>
    %120 = vector.broadcast %119 : vector<8x1xi1> to vector<8x64xi1>
    %121 = arith.select %120, %111, %85 : vector<8x64xi1>, vector<8x64xf32>
    %c24 = arith.constant 24 : index
    %c0_37 = arith.constant 0 : index
    %122 = vector.load %arg8[%c24, %c0_37] : memref<64x256xf32, #tpu.memory_space<vmem>>, vector<8x256xf32>
    %cst_38 = arith.constant dense<0.000000e+00> : vector<8x256xf32>
    %123 = tpu.matmul %118, %1, %cst_38 {dimension_numbers = #tpu.dot_dimension_numbers<[1], [0], [0], [1], [0, 0, 1, 1], [], []>} : vector<8x64xf32>, vector<64x256xf32>, vector<8x256xf32> -> vector<8x256xf32>
    %124 = arith.addf %122, %123 : vector<8x256xf32>
    %125 = vector.extract_strided_slice %124 {offsets = [0, 0], sizes = [8, 128], strides = [1, 1]} : vector<8x256xf32> to vector<8x128xf32>
    %cst_39 = arith.constant 5.000000e-01 : f32
    %126 = vector.broadcast %cst_39 : f32 to vector<8x128xf32>
    %127 = arith.mulf %126, %125 : vector<8x128xf32>
    %128 = math.tanh %127 : vector<8x128xf32>
    %cst_40 = arith.constant 5.000000e-01 : f32
    %129 = vector.broadcast %cst_40 : f32 to vector<8x128xf32>
    %130 = arith.mulf %129, %128 : vector<8x128xf32>
    %cst_41 = arith.constant 5.000000e-01 : f32
    %131 = vector.broadcast %cst_41 : f32 to vector<8x128xf32>
    %132 = arith.addf %130, %131 : vector<8x128xf32>
    %133 = vector.extract_strided_slice %124 {offsets = [0, 128], sizes = [8, 64], strides = [1, 1]} : vector<8x256xf32> to vector<8x64xf32>
    %cst_42 = arith.constant 5.000000e-01 : f32
    %134 = vector.broadcast %cst_42 : f32 to vector<8x64xf32>
    %135 = arith.mulf %134, %133 : vector<8x64xf32>
    %136 = math.tanh %135 : vector<8x64xf32>
    %cst_43 = arith.constant 5.000000e-01 : f32
    %137 = vector.broadcast %cst_43 : f32 to vector<8x64xf32>
    %138 = arith.mulf %137, %136 : vector<8x64xf32>
    %cst_44 = arith.constant 5.000000e-01 : f32
    %139 = vector.broadcast %cst_44 : f32 to vector<8x64xf32>
    %140 = arith.addf %138, %139 : vector<8x64xf32>
    %141 = vector.extract_strided_slice %124 {offsets = [0, 192], sizes = [8, 64], strides = [1, 1]} : vector<8x256xf32> to vector<8x64xf32>
    %142 = math.tanh %141 : vector<8x64xf32>
    %143 = vector.extract_strided_slice %132 {offsets = [0, 64], sizes = [8, 64], strides = [1, 1]} : vector<8x128xf32> to vector<8x64xf32>
    %144 = arith.mulf %143, %121 : vector<8x64xf32>
    %145 = vector.extract_strided_slice %132 {offsets = [0, 0], sizes = [8, 64], strides = [1, 1]} : vector<8x128xf32> to vector<8x64xf32>
    %146 = arith.mulf %145, %142 : vector<8x64xf32>
    %147 = arith.addf %144, %146 : vector<8x64xf32>
    %148 = math.tanh %147 : vector<8x64xf32>
    %149 = arith.mulf %140, %148 : vector<8x64xf32>
    %c3_i32 = arith.constant 3 : i32
    %150 = vector.broadcast %c3_i32 : i32 to vector<8x1xi32>
    %151 = arith.cmpi sgt, %0, %150 : vector<8x1xi32>
    %152 = vector.shape_cast %151 : vector<8x1xi1> to vector<8x1xi1>
    %153 = vector.broadcast %152 : vector<8x1xi1> to vector<8x64xi1>
    %154 = arith.select %153, %149, %118 : vector<8x64xi1>, vector<8x64xf32>
    %155 = vector.shape_cast %151 : vector<8x1xi1> to vector<8x1xi1>
    %156 = vector.broadcast %155 : vector<8x1xi1> to vector<8x64xi1>
    %157 = arith.select %156, %147, %121 : vector<8x64xi1>, vector<8x64xf32>
    %c32 = arith.constant 32 : index
    %c0_45 = arith.constant 0 : index
    %158 = vector.load %arg8[%c32, %c0_45] : memref<64x256xf32, #tpu.memory_space<vmem>>, vector<8x256xf32>
    %cst_46 = arith.constant dense<0.000000e+00> : vector<8x256xf32>
    %159 = tpu.matmul %154, %1, %cst_46 {dimension_numbers = #tpu.dot_dimension_numbers<[1], [0], [0], [1], [0, 0, 1, 1], [], []>} : vector<8x64xf32>, vector<64x256xf32>, vector<8x256xf32> -> vector<8x256xf32>
    %160 = arith.addf %158, %159 : vector<8x256xf32>
    %161 = vector.extract_strided_slice %160 {offsets = [0, 0], sizes = [8, 128], strides = [1, 1]} : vector<8x256xf32> to vector<8x128xf32>
    %cst_47 = arith.constant 5.000000e-01 : f32
    %162 = vector.broadcast %cst_47 : f32 to vector<8x128xf32>
    %163 = arith.mulf %162, %161 : vector<8x128xf32>
    %164 = math.tanh %163 : vector<8x128xf32>
    %cst_48 = arith.constant 5.000000e-01 : f32
    %165 = vector.broadcast %cst_48 : f32 to vector<8x128xf32>
    %166 = arith.mulf %165, %164 : vector<8x128xf32>
    %cst_49 = arith.constant 5.000000e-01 : f32
    %167 = vector.broadcast %cst_49 : f32 to vector<8x128xf32>
    %168 = arith.addf %166, %167 : vector<8x128xf32>
    %169 = vector.extract_strided_slice %160 {offsets = [0, 128], sizes = [8, 64], strides = [1, 1]} : vector<8x256xf32> to vector<8x64xf32>
    %cst_50 = arith.constant 5.000000e-01 : f32
    %170 = vector.broadcast %cst_50 : f32 to vector<8x64xf32>
    %171 = arith.mulf %170, %169 : vector<8x64xf32>
    %172 = math.tanh %171 : vector<8x64xf32>
    %cst_51 = arith.constant 5.000000e-01 : f32
    %173 = vector.broadcast %cst_51 : f32 to vector<8x64xf32>
    %174 = arith.mulf %173, %172 : vector<8x64xf32>
    %cst_52 = arith.constant 5.000000e-01 : f32
    %175 = vector.broadcast %cst_52 : f32 to vector<8x64xf32>
    %176 = arith.addf %174, %175 : vector<8x64xf32>
    %177 = vector.extract_strided_slice %160 {offsets = [0, 192], sizes = [8, 64], strides = [1, 1]} : vector<8x256xf32> to vector<8x64xf32>
    %178 = math.tanh %177 : vector<8x64xf32>
    %179 = vector.extract_strided_slice %168 {offsets = [0, 64], sizes = [8, 64], strides = [1, 1]} : vector<8x128xf32> to vector<8x64xf32>
    %180 = arith.mulf %179, %157 : vector<8x64xf32>
    %181 = vector.extract_strided_slice %168 {offsets = [0, 0], sizes = [8, 64], strides = [1, 1]} : vector<8x128xf32> to vector<8x64xf32>
    %182 = arith.mulf %181, %178 : vector<8x64xf32>
    %183 = arith.addf %180, %182 : vector<8x64xf32>
    %184 = math.tanh %183 : vector<8x64xf32>
    %185 = arith.mulf %176, %184 : vector<8x64xf32>
    %c4_i32 = arith.constant 4 : i32
    %186 = vector.broadcast %c4_i32 : i32 to vector<8x1xi32>
    %187 = arith.cmpi sgt, %0, %186 : vector<8x1xi32>
    %188 = vector.shape_cast %187 : vector<8x1xi1> to vector<8x1xi1>
    %189 = vector.broadcast %188 : vector<8x1xi1> to vector<8x64xi1>
    %190 = arith.select %189, %185, %154 : vector<8x64xi1>, vector<8x64xf32>
    %191 = vector.shape_cast %187 : vector<8x1xi1> to vector<8x1xi1>
    %192 = vector.broadcast %191 : vector<8x1xi1> to vector<8x64xi1>
    %193 = arith.select %192, %183, %157 : vector<8x64xi1>, vector<8x64xf32>
    %c40 = arith.constant 40 : index
    %c0_53 = arith.constant 0 : index
    %194 = vector.load %arg8[%c40, %c0_53] : memref<64x256xf32, #tpu.memory_space<vmem>>, vector<8x256xf32>
    %cst_54 = arith.constant dense<0.000000e+00> : vector<8x256xf32>
    %195 = tpu.matmul %190, %1, %cst_54 {dimension_numbers = #tpu.dot_dimension_numbers<[1], [0], [0], [1], [0, 0, 1, 1], [], []>} : vector<8x64xf32>, vector<64x256xf32>, vector<8x256xf32> -> vector<8x256xf32>
    %196 = arith.addf %194, %195 : vector<8x256xf32>
    %197 = vector.extract_strided_slice %196 {offsets = [0, 0], sizes = [8, 128], strides = [1, 1]} : vector<8x256xf32> to vector<8x128xf32>
    %cst_55 = arith.constant 5.000000e-01 : f32
    %198 = vector.broadcast %cst_55 : f32 to vector<8x128xf32>
    %199 = arith.mulf %198, %197 : vector<8x128xf32>
    %200 = math.tanh %199 : vector<8x128xf32>
    %cst_56 = arith.constant 5.000000e-01 : f32
    %201 = vector.broadcast %cst_56 : f32 to vector<8x128xf32>
    %202 = arith.mulf %201, %200 : vector<8x128xf32>
    %cst_57 = arith.constant 5.000000e-01 : f32
    %203 = vector.broadcast %cst_57 : f32 to vector<8x128xf32>
    %204 = arith.addf %202, %203 : vector<8x128xf32>
    %205 = vector.extract_strided_slice %196 {offsets = [0, 128], sizes = [8, 64], strides = [1, 1]} : vector<8x256xf32> to vector<8x64xf32>
    %cst_58 = arith.constant 5.000000e-01 : f32
    %206 = vector.broadcast %cst_58 : f32 to vector<8x64xf32>
    %207 = arith.mulf %206, %205 : vector<8x64xf32>
    %208 = math.tanh %207 : vector<8x64xf32>
    %cst_59 = arith.constant 5.000000e-01 : f32
    %209 = vector.broadcast %cst_59 : f32 to vector<8x64xf32>
    %210 = arith.mulf %209, %208 : vector<8x64xf32>
    %cst_60 = arith.constant 5.000000e-01 : f32
    %211 = vector.broadcast %cst_60 : f32 to vector<8x64xf32>
    %212 = arith.addf %210, %211 : vector<8x64xf32>
    %213 = vector.extract_strided_slice %196 {offsets = [0, 192], sizes = [8, 64], strides = [1, 1]} : vector<8x256xf32> to vector<8x64xf32>
    %214 = math.tanh %213 : vector<8x64xf32>
    %215 = vector.extract_strided_slice %204 {offsets = [0, 64], sizes = [8, 64], strides = [1, 1]} : vector<8x128xf32> to vector<8x64xf32>
    %216 = arith.mulf %215, %193 : vector<8x64xf32>
    %217 = vector.extract_strided_slice %204 {offsets = [0, 0], sizes = [8, 64], strides = [1, 1]} : vector<8x128xf32> to vector<8x64xf32>
    %218 = arith.mulf %217, %214 : vector<8x64xf32>
    %219 = arith.addf %216, %218 : vector<8x64xf32>
    %220 = math.tanh %219 : vector<8x64xf32>
    %221 = arith.mulf %212, %220 : vector<8x64xf32>
    %c5_i32 = arith.constant 5 : i32
    %222 = vector.broadcast %c5_i32 : i32 to vector<8x1xi32>
    %223 = arith.cmpi sgt, %0, %222 : vector<8x1xi32>
    %224 = vector.shape_cast %223 : vector<8x1xi1> to vector<8x1xi1>
    %225 = vector.broadcast %224 : vector<8x1xi1> to vector<8x64xi1>
    %226 = arith.select %225, %221, %190 : vector<8x64xi1>, vector<8x64xf32>
    %227 = vector.shape_cast %223 : vector<8x1xi1> to vector<8x1xi1>
    %228 = vector.broadcast %227 : vector<8x1xi1> to vector<8x64xi1>
    %229 = arith.select %228, %219, %193 : vector<8x64xi1>, vector<8x64xf32>
    %c48 = arith.constant 48 : index
    %c0_61 = arith.constant 0 : index
    %230 = vector.load %arg8[%c48, %c0_61] : memref<64x256xf32, #tpu.memory_space<vmem>>, vector<8x256xf32>
    %cst_62 = arith.constant dense<0.000000e+00> : vector<8x256xf32>
    %231 = tpu.matmul %226, %1, %cst_62 {dimension_numbers = #tpu.dot_dimension_numbers<[1], [0], [0], [1], [0, 0, 1, 1], [], []>} : vector<8x64xf32>, vector<64x256xf32>, vector<8x256xf32> -> vector<8x256xf32>
    %232 = arith.addf %230, %231 : vector<8x256xf32>
    %233 = vector.extract_strided_slice %232 {offsets = [0, 0], sizes = [8, 128], strides = [1, 1]} : vector<8x256xf32> to vector<8x128xf32>
    %cst_63 = arith.constant 5.000000e-01 : f32
    %234 = vector.broadcast %cst_63 : f32 to vector<8x128xf32>
    %235 = arith.mulf %234, %233 : vector<8x128xf32>
    %236 = math.tanh %235 : vector<8x128xf32>
    %cst_64 = arith.constant 5.000000e-01 : f32
    %237 = vector.broadcast %cst_64 : f32 to vector<8x128xf32>
    %238 = arith.mulf %237, %236 : vector<8x128xf32>
    %cst_65 = arith.constant 5.000000e-01 : f32
    %239 = vector.broadcast %cst_65 : f32 to vector<8x128xf32>
    %240 = arith.addf %238, %239 : vector<8x128xf32>
    %241 = vector.extract_strided_slice %232 {offsets = [0, 128], sizes = [8, 64], strides = [1, 1]} : vector<8x256xf32> to vector<8x64xf32>
    %cst_66 = arith.constant 5.000000e-01 : f32
    %242 = vector.broadcast %cst_66 : f32 to vector<8x64xf32>
    %243 = arith.mulf %242, %241 : vector<8x64xf32>
    %244 = math.tanh %243 : vector<8x64xf32>
    %cst_67 = arith.constant 5.000000e-01 : f32
    %245 = vector.broadcast %cst_67 : f32 to vector<8x64xf32>
    %246 = arith.mulf %245, %244 : vector<8x64xf32>
    %cst_68 = arith.constant 5.000000e-01 : f32
    %247 = vector.broadcast %cst_68 : f32 to vector<8x64xf32>
    %248 = arith.addf %246, %247 : vector<8x64xf32>
    %249 = vector.extract_strided_slice %232 {offsets = [0, 192], sizes = [8, 64], strides = [1, 1]} : vector<8x256xf32> to vector<8x64xf32>
    %250 = math.tanh %249 : vector<8x64xf32>
    %251 = vector.extract_strided_slice %240 {offsets = [0, 64], sizes = [8, 64], strides = [1, 1]} : vector<8x128xf32> to vector<8x64xf32>
    %252 = arith.mulf %251, %229 : vector<8x64xf32>
    %253 = vector.extract_strided_slice %240 {offsets = [0, 0], sizes = [8, 64], strides = [1, 1]} : vector<8x128xf32> to vector<8x64xf32>
    %254 = arith.mulf %253, %250 : vector<8x64xf32>
    %255 = arith.addf %252, %254 : vector<8x64xf32>
    %256 = math.tanh %255 : vector<8x64xf32>
    %257 = arith.mulf %248, %256 : vector<8x64xf32>
    %c6_i32 = arith.constant 6 : i32
    %258 = vector.broadcast %c6_i32 : i32 to vector<8x1xi32>
    %259 = arith.cmpi sgt, %0, %258 : vector<8x1xi32>
    %260 = vector.shape_cast %259 : vector<8x1xi1> to vector<8x1xi1>
    %261 = vector.broadcast %260 : vector<8x1xi1> to vector<8x64xi1>
    %262 = arith.select %261, %257, %226 : vector<8x64xi1>, vector<8x64xf32>
    %263 = vector.shape_cast %259 : vector<8x1xi1> to vector<8x1xi1>
    %264 = vector.broadcast %263 : vector<8x1xi1> to vector<8x64xi1>
    %265 = arith.select %264, %255, %229 : vector<8x64xi1>, vector<8x64xf32>
    %c56 = arith.constant 56 : index
    %c0_69 = arith.constant 0 : index
    %266 = vector.load %arg8[%c56, %c0_69] : memref<64x256xf32, #tpu.memory_space<vmem>>, vector<8x256xf32>
    %cst_70 = arith.constant dense<0.000000e+00> : vector<8x256xf32>
    %267 = tpu.matmul %262, %1, %cst_70 {dimension_numbers = #tpu.dot_dimension_numbers<[1], [0], [0], [1], [0, 0, 1, 1], [], []>} : vector<8x64xf32>, vector<64x256xf32>, vector<8x256xf32> -> vector<8x256xf32>
    %268 = arith.addf %266, %267 : vector<8x256xf32>
    %269 = vector.extract_strided_slice %268 {offsets = [0, 0], sizes = [8, 128], strides = [1, 1]} : vector<8x256xf32> to vector<8x128xf32>
    %cst_71 = arith.constant 5.000000e-01 : f32
    %270 = vector.broadcast %cst_71 : f32 to vector<8x128xf32>
    %271 = arith.mulf %270, %269 : vector<8x128xf32>
    %272 = math.tanh %271 : vector<8x128xf32>
    %cst_72 = arith.constant 5.000000e-01 : f32
    %273 = vector.broadcast %cst_72 : f32 to vector<8x128xf32>
    %274 = arith.mulf %273, %272 : vector<8x128xf32>
    %cst_73 = arith.constant 5.000000e-01 : f32
    %275 = vector.broadcast %cst_73 : f32 to vector<8x128xf32>
    %276 = arith.addf %274, %275 : vector<8x128xf32>
    %277 = vector.extract_strided_slice %268 {offsets = [0, 128], sizes = [8, 64], strides = [1, 1]} : vector<8x256xf32> to vector<8x64xf32>
    %cst_74 = arith.constant 5.000000e-01 : f32
    %278 = vector.broadcast %cst_74 : f32 to vector<8x64xf32>
    %279 = arith.mulf %278, %277 : vector<8x64xf32>
    %280 = math.tanh %279 : vector<8x64xf32>
    %cst_75 = arith.constant 5.000000e-01 : f32
    %281 = vector.broadcast %cst_75 : f32 to vector<8x64xf32>
    %282 = arith.mulf %281, %280 : vector<8x64xf32>
    %cst_76 = arith.constant 5.000000e-01 : f32
    %283 = vector.broadcast %cst_76 : f32 to vector<8x64xf32>
    %284 = arith.addf %282, %283 : vector<8x64xf32>
    %285 = vector.extract_strided_slice %268 {offsets = [0, 192], sizes = [8, 64], strides = [1, 1]} : vector<8x256xf32> to vector<8x64xf32>
    %286 = math.tanh %285 : vector<8x64xf32>
    %287 = vector.extract_strided_slice %276 {offsets = [0, 64], sizes = [8, 64], strides = [1, 1]} : vector<8x128xf32> to vector<8x64xf32>
    %288 = arith.mulf %287, %265 : vector<8x64xf32>
    %289 = vector.extract_strided_slice %276 {offsets = [0, 0], sizes = [8, 64], strides = [1, 1]} : vector<8x128xf32> to vector<8x64xf32>
    %290 = arith.mulf %289, %286 : vector<8x64xf32>
    %291 = arith.addf %288, %290 : vector<8x64xf32>
    %292 = math.tanh %291 : vector<8x64xf32>
    %293 = arith.mulf %284, %292 : vector<8x64xf32>
    %c7_i32 = arith.constant 7 : i32
    %294 = vector.broadcast %c7_i32 : i32 to vector<8x1xi32>
    %295 = arith.cmpi sgt, %0, %294 : vector<8x1xi32>
    %296 = vector.shape_cast %295 : vector<8x1xi1> to vector<8x1xi1>
    %297 = vector.broadcast %296 : vector<8x1xi1> to vector<8x64xi1>
    %298 = arith.select %297, %293, %262 : vector<8x64xi1>, vector<8x64xf32>
    %299 = vector.extract_strided_slice %8 {offsets = [56, 0], sizes = [8, 48], strides = [1, 1]} : vector<64x48xf32> to vector<8x48xf32>
    %c0_77 = arith.constant 0 : index
    %c256 = arith.constant 256 : index
    %300 = vector.load %arg3[%c0_77, %c256] : memref<48x512xf32, #tpu.memory_space<vmem>>, vector<48x256xf32>
    %cst_78 = arith.constant dense<0.000000e+00> : vector<8x256xf32>
    %301 = tpu.matmul %299, %300, %cst_78 {dimension_numbers = #tpu.dot_dimension_numbers<[1], [0], [0], [1], [0, 0, 1, 1], [], []>} : vector<8x48xf32>, vector<48x256xf32>, vector<8x256xf32> -> vector<8x256xf32>
    %302 = vector.extract_strided_slice %301 {offsets = [0, 0], sizes = [8, 64], strides = [1, 1]} : vector<8x256xf32> to vector<8x64xf32>
    %cst_79 = arith.constant 5.000000e-01 : f32
    %303 = vector.broadcast %cst_79 : f32 to vector<8x64xf32>
    %304 = arith.mulf %303, %302 : vector<8x64xf32>
    %305 = math.tanh %304 : vector<8x64xf32>
    %cst_80 = arith.constant 5.000000e-01 : f32
    %306 = vector.broadcast %cst_80 : f32 to vector<8x64xf32>
    %307 = arith.mulf %306, %305 : vector<8x64xf32>
    %cst_81 = arith.constant 5.000000e-01 : f32
    %308 = vector.broadcast %cst_81 : f32 to vector<8x64xf32>
    %309 = arith.addf %307, %308 : vector<8x64xf32>
    %310 = vector.extract_strided_slice %301 {offsets = [0, 128], sizes = [8, 64], strides = [1, 1]} : vector<8x256xf32> to vector<8x64xf32>
    %cst_82 = arith.constant 5.000000e-01 : f32
    %311 = vector.broadcast %cst_82 : f32 to vector<8x64xf32>
    %312 = arith.mulf %311, %310 : vector<8x64xf32>
    %313 = math.tanh %312 : vector<8x64xf32>
    %cst_83 = arith.constant 5.000000e-01 : f32
    %314 = vector.broadcast %cst_83 : f32 to vector<8x64xf32>
    %315 = arith.mulf %314, %313 : vector<8x64xf32>
    %cst_84 = arith.constant 5.000000e-01 : f32
    %316 = vector.broadcast %cst_84 : f32 to vector<8x64xf32>
    %317 = arith.addf %315, %316 : vector<8x64xf32>
    %318 = vector.extract_strided_slice %301 {offsets = [0, 192], sizes = [8, 64], strides = [1, 1]} : vector<8x256xf32> to vector<8x64xf32>
    %319 = math.tanh %318 : vector<8x64xf32>
    %320 = arith.mulf %309, %319 : vector<8x64xf32>
    %321 = math.tanh %320 : vector<8x64xf32>
    %322 = arith.mulf %317, %321 : vector<8x64xf32>
    %c8_i32 = arith.constant 8 : i32
    %323 = vector.broadcast %c8_i32 : i32 to vector<8x1xi32>
    %324 = arith.cmpi sge, %0, %323 : vector<8x1xi32>
    %cst_85 = arith.constant 0.000000e+00 : f32
    %325 = vector.shape_cast %324 : vector<8x1xi1> to vector<8x1xi1>
    %326 = vector.broadcast %325 : vector<8x1xi1> to vector<8x64xi1>
    %327 = vector.broadcast %cst_85 : f32 to vector<8x64xf32>
    %328 = arith.select %326, %298, %327 : vector<8x64xi1>, vector<8x64xf32>
    %cst_86 = arith.constant 0.000000e+00 : f32
    %329 = vector.shape_cast %324 : vector<8x1xi1> to vector<8x1xi1>
    %330 = vector.broadcast %329 : vector<8x1xi1> to vector<8x64xi1>
    %331 = vector.broadcast %cst_86 : f32 to vector<8x64xf32>
    %332 = arith.select %330, %322, %331 : vector<8x64xi1>, vector<8x64xf32>
    %c0_87 = arith.constant 0 : index
    %c0_88 = arith.constant 0 : index
    %333 = vector.load %arg5[%c0_87, %c0_88] : memref<128x128xf32, #tpu.memory_space<vmem>>, vector<64x128xf32>
    %cst_89 = arith.constant dense<0.000000e+00> : vector<8x128xf32>
    %334 = tpu.matmul %328, %333, %cst_89 {dimension_numbers = #tpu.dot_dimension_numbers<[1], [0], [0], [1], [0, 0, 1, 1], [], []>} : vector<8x64xf32>, vector<64x128xf32>, vector<8x128xf32> -> vector<8x128xf32>
    %c64 = arith.constant 64 : index
    %c0_90 = arith.constant 0 : index
    %335 = vector.load %arg5[%c64, %c0_90] : memref<128x128xf32, #tpu.memory_space<vmem>>, vector<64x128xf32>
    %cst_91 = arith.constant dense<0.000000e+00> : vector<8x128xf32>
    %336 = tpu.matmul %332, %335, %cst_91 {dimension_numbers = #tpu.dot_dimension_numbers<[1], [0], [0], [1], [0, 0, 1, 1], [], []>} : vector<8x64xf32>, vector<64x128xf32>, vector<8x128xf32> -> vector<8x128xf32>
    %337 = arith.addf %334, %336 : vector<8x128xf32>
    %c0_92 = arith.constant 0 : index
    %c0_93 = arith.constant 0 : index
    %338 = vector.load %arg6[%c0_92, %c0_93] : memref<8x128xf32, #tpu.memory_space<vmem>>, vector<1x128xf32>
    %339 = vector.broadcast %338 : vector<1x128xf32> to vector<8x128xf32>
    %340 = arith.addf %337, %339 : vector<8x128xf32>
    %c0_94 = arith.constant 0 : index
    %c0_95 = arith.constant 0 : index
    %341 = vector.load %arg7[%c0_94, %c0_95] : memref<8x128xf32, #tpu.memory_space<vmem>>, vector<8x128xf32>
    tpu.vector_store %arg7[%c0_94, %c0_95], %340 {strides = array<i32>} : memref<8x128xf32, #tpu.memory_space<vmem>>, vector<8x128xf32>,
    return
  }
  func.func @transform_0(%arg0: i32) -> (i32, i32, i32) {
    %c0_i32 = arith.constant 0 : i32
    %c0_i32_0 = arith.constant 0 : i32
    %c0_i32_1 = arith.constant 0 : i32
    return %arg0, %c0_i32, %c0_i32_0 : i32, i32, i32
  }
  func.func @transform_1(%arg0: i32) -> (i32, i32) {
    %c0_i32 = arith.constant 0 : i32
    %c0_i32_0 = arith.constant 0 : i32
    return %arg0, %c0_i32 : i32, i32
  }
  func.func @transform_2(%arg0: i32) -> (i32, i32) {
    %c0_i32 = arith.constant 0 : i32
    %c0_i32_0 = arith.constant 0 : i32
    %c0_i32_1 = arith.constant 0 : i32
    return %c0_i32, %c0_i32_0 : i32, i32
  }
  func.func @transform_3(%arg0: i32) -> (i32, i32) {
    %c0_i32 = arith.constant 0 : i32
    %c0_i32_0 = arith.constant 0 : i32
    %c0_i32_1 = arith.constant 0 : i32
    return %c0_i32, %c0_i32_0 : i32, i32
  }
  func.func @transform_4(%arg0: i32) -> (i32, i32) {
    %c0_i32 = arith.constant 0 : i32
    %c0_i32_0 = arith.constant 0 : i32
    %c0_i32_1 = arith.constant 0 : i32
    return %c0_i32, %c0_i32_0 : i32, i32
  }
  func.func @transform_5(%arg0: i32) -> (i32, i32) {
    %c0_i32 = arith.constant 0 : i32
    %c0_i32_0 = arith.constant 0 : i32
    %c0_i32_1 = arith.constant 0 : i32
    return %c0_i32, %c0_i32_0 : i32, i32
  }
  func.func @transform_6(%arg0: i32) -> (i32, i32) {
    %c0_i32 = arith.constant 0 : i32
    %c0_i32_0 = arith.constant 0 : i32
    return %arg0, %c0_i32 : i32, i32
  }
}

</mosaic_0001>

<bundles_post_ra>
// kernel: tpu_custom_call.1
= control target key start
LH: loop header
LB: loop body
LE: loop exit
PB: predicated region body
PF: predicated region fallthrough
CT: control target
= control target key end

     0   :  { %11 = vsyncpa [#allocation4], 0  ;;  %s2347_s0 = inlined_call_operand.vmem [shape: s32[1,64,1], index: 0, kind: input, shape index: {}]   ;;  %s2348_s1 = inlined_call_operand.vmem [shape: s32[8,1], index: 1, kind: input, shape index: {}]   ;;  %s2349_s2 = inlined_call_operand.hbm [shape: f32[48,512], index: 2, kind: input, shape index: {}]   ;;  %s2350_s3 = inlined_call_operand.hbm [shape: f32[64,256], index: 3, kind: input, shape index: {}]   ;;  %s2351_s4 = inlined_call_operand.hbm [shape: f32[128,128], index: 4, kind: input, shape index: {}]   ;;  %s2352_s5 = inlined_call_operand.vmem [shape: f32[8,128], index: 5, kind: input, shape index: {}]   ;;  %s2353_s6 = inlined_call_operand.hbm [shape: f32[8,128], index: 6, kind: output, shape index: {}]  }
   0x1   :  { %12 = vsyncpa [#allocation7], 0 }
   0x2   :  { %13 = vsyncpa [#allocation5], 0  ;;  %s1952_s21 = smov [#allocation6]   ;;  %s1858_s25 = scalar_lea.hbm %s2350_s3, 2048 }
   0x3   :  { %s35_s22 = sshll.u32 %s1952_s21, 4  ;;  %p1859_p0 = scmp.ne.s32.totalorder %s2350_s3, %s1858_s25  ;;  %s36_s22 = int_to_ptr.vmem [resolvable:$true] %s35_s22 }
   0x4   :  { %p1862_p1 = scmp.lt.u32.totalorder %s1858_s25, %s2350_s3 }
   0x6   :  { %p1864_p2 = pnand %p1862_p1, %p1859_p0 }
   0x8   :  { %1867 = shalt.err (!%p1864_p2)
}
   0x9   :  { %s1868_s30 = scalar_lea.vmem %s36_s22, 2048  ;;  %p1873_p4 = scmp.lt.s32.totalorder %s36_s22, %s36_s22 }
   0xa   :  { %p1869_p3 = scmp.ne.s32.totalorder %s36_s22, %s1868_s30  ;;  %p1874_p5 = scmp.lt.s32.totalorder %s1868_s30, %s1868_s30 }
   0xc   :  { %p1875_p6 = por %p1874_p5, %p1873_p4 }
   0xe   :  { %p1876_p7 = pnand %p1875_p6, %p1869_p3 }
  0x10   :  { %1879 = shalt.err (!%p1876_p7)
}
  0x11   :  { %s1953_s7 = smov 256   ;;  %s1954_s8 = smov 16  }
  0x12   :  { %41 = dma.hbm_to_vmem [thread:$0]  %s2350_s3, 2048, %s36_s22, [#allocation7], %s1953_s7, %s1953_s7, %s1954_s8  }
  0x13   :  { %s1955_s11 = smov [#allocation3]   ;;  %s1880_s15 = scalar_lea.hbm %s2349_s2, 3072 }
  0x14   :  { %s23_s12 = sshll.u32 %s1955_s11, 4  ;;  %p1881_p8 = scmp.ne.s32.totalorder %s2349_s2, %s1880_s15  ;;  %s24_s12 = int_to_ptr.vmem [resolvable:$true] %s23_s12 }
  0x15   :  { %p1884_p9 = scmp.lt.u32.totalorder %s1880_s15, %s2349_s2 }
  0x17   :  { %p1886_p10 = pnand %p1884_p9, %p1881_p8 }
  0x19   :  { %1889 = shalt.err (!%p1886_p10)
}
  0x1a   :  { %s1890_s20 = scalar_lea.vmem %s24_s12, 3072  ;;  %p1895_p12 = scmp.lt.s32.totalorder %s24_s12, %s24_s12 }
  0x1b   :  { %p1891_p11 = scmp.ne.s32.totalorder %s24_s12, %s1890_s20  ;;  %p1896_p13 = scmp.lt.s32.totalorder %s1890_s20, %s1890_s20 }
  0x1d   :  { %p1897_p0 = por %p1896_p13, %p1895_p12 }
  0x1f   :  { %p1898_p1 = pnand %p1897_p0, %p1891_p11 }
  0x21   :  { %1901 = shalt.err (!%p1898_p1)
}
  0x22   :  { %s1956_s3 = smov 512   ;;  %s1957_s21 = smov 32  }
  0x23   :  { %29 = dma.hbm_to_vmem [thread:$0]  %s2349_s2, 3072, %s24_s12, [#allocation4], %s1956_s3, %s1956_s3, %s1957_s21  }
  0x24   :  { %s1958_s24 = smov [#allocation8]   ;;  %s1902_s28 = scalar_lea.hbm %s2351_s4, 2048 }
  0x25   :  { %s47_s25 = sshll.u32 %s1958_s24, 4  ;;  %p1903_p2 = scmp.ne.s32.totalorder %s2351_s4, %s1902_s28  ;;  %s48_s25 = int_to_ptr.vmem [resolvable:$true] %s47_s25 }
  0x26   :  { %p1906_p3 = scmp.lt.u32.totalorder %s1902_s28, %s2351_s4 }
  0x28   :  { %p1908_p4 = pnand %p1906_p3, %p1903_p2 }
  0x2a   :  { %1911 = shalt.err (!%p1908_p4)
}
  0x2b   :  { %s1912_s9 = scalar_lea.vmem %s48_s25, 2048  ;;  %p1917_p6 = scmp.lt.s32.totalorder %s48_s25, %s48_s25 }
  0x2c   :  { %p1913_p5 = scmp.ne.s32.totalorder %s48_s25, %s1912_s9  ;;  %p1918_p7 = scmp.lt.s32.totalorder %s1912_s9, %s1912_s9 }
  0x2e   :  { %p1919_p8 = por %p1918_p7, %p1917_p6 }
  0x30   :  { %p1920_p9 = pnand %p1919_p8, %p1913_p5 }
  0x32   :  { %1923 = shalt.err (!%p1920_p9)
}
  0x33   :  { %s1959_s2 = smov 128   ;;  %s1960_s10 = smov 8  }
  0x34   :  { %53 = dma.hbm_to_vmem [thread:$0]  %s2351_s4, 2048, %s48_s25, [#allocation7], %s1959_s2, %s1959_s2, %s1960_s10  }
  0x35   :  { %1946 = dma.done.wait [#allocation4], 3072  }
  0x36   :  { %1947 = vsyncadd [#allocation4], 4294964224 }
  0x37   :  { %1948 = dma.done.wait [#allocation7], 4096  }
  0x38   :  { %1949 = vsyncadd [#allocation7], 4294963200  ;;  %v1961_v0 = vmov 0   ;;  %v1962_v1 = vmov 0.0   ;;  %v84_v2 = vld [vmem:[%s2347_s0 + $0x10] sm:$0xff]  ;;  %v82_v3 = vld [vmem:[%s2347_s0] sm:$0xff]  ;;  %v90_v52 = vlaneseq }
  0x39   :  { %1785 = vset.pattern.permute.xlu1 %v1961_v0  ;;  %1784 = vset.pattern.permute.xlu0 %v1961_v0  ;;  %v85_v4 = vld [vmem:[%s2347_s0 + $0x18] sm:$0xff]  ;;  %v83_v5 = vld [vmem:[%s2347_s0 + $0x8] sm:$0xff]  ;;  %v140_v8 = vld [vmem:[#allocation3] sm:$0xff]  ;;  %vm152_vm0 = vcmask 392192   ;;  %s1963_s28 = smov 64   ;;  %vm308_vm10 = vcmask 523264  }
  0x3a   :  { %241 = vmatprep.mubr.f32.mxu1 %v1962_v1  ;;  %600 = vmatprep.mubr.f32.mxu0 %v1962_v1  ;;  %v141_v6 = vld [vmem:[#allocation3 + $0x8] sm:$0xff]  ;;  %v142_v9 = vld [vmem:[#allocation3 + $0x20] sm:$0xff]  ;;  %v69_v23 = vld [vmem:[#allocation6 + $0x18] sm:$0xff]  ;;  %v91_v53 = vand.u32 127, %v90_v52  ;;  %s1966_s30 = smov [#allocation9]  }
  0x3b   :  { %99 = vperm.xlu1 %1785, %v84_v2   ;;  %93 = vperm.xlu0 %1784, %v82_v3   ;;  %v143_v7 = vld [vmem:[#allocation3 + $0x28] sm:$0xff]  ;;  %v1579_v11 = vpack.c.bf16 %v142_v9, %v140_v8  ;;  %v144_v14 = vld [vmem:[#allocation3 + $0x40] sm:$0xff]  ;;  %v68_v25 = vld [vmem:[#allocation6 + $0x10] sm:$0xff]  ;;  %s1484_s7 = sshll.u32 %s1966_s30, 4  ;;  %s1485_s7 = int_to_ptr.vmem [resolvable:$true] %s1484_s7 }
  0x3c   :  { %v1577_v10 = vpack.c.bf16 %v143_v7, %v141_v6  ;;  %v145_v12 = vld [vmem:[#allocation3 + $0x48] sm:$0xff]  ;;  %v146_v16 = vld [vmem:[#allocation3 + $0x60] sm:$0xff]  ;;  %v89_v30 = vld [vmem:[%s2347_s0 + $0x38] sm:$0xff]  ;;  %s1924_s8 = scalar_lea.vmem %s1485_s7, 128  ;;  %p1929_p11 = scmp.lt.s32.totalorder %s1485_s7, %s1485_s7 }
  0x3d   :  { %v147_v13 = vld [vmem:[#allocation3 + $0x68] sm:$0xff]  ;;  %v86_v20 = vld [vmem:[%s2347_s0 + $0x20] sm:$0xff]  ;;  %v1583_v22 = vpack.c.bf16 %v146_v16, %v144_v14  ;;  %v88_v32 = vld [vmem:[%s2347_s0 + $0x30] sm:$0xff]  ;;  %p1925_p10 = scmp.ne.s32.totalorder %s1485_s7, %s1924_s8  ;;  %p1930_p12 = scmp.lt.s32.totalorder %s1924_s8, %s1924_s8 }
  0x3e   :  { %v1581_v15 = vpack.c.bf16 %v147_v13, %v145_v12  ;;  %v149_v17 = vld [vmem:[#allocation3 + $0x88] sm:$0xff]  ;;  %1578 = vmatprep.subr.bf16.mxu1 %v1577_v10  ;;  %v66_v24 = vld [vmem:[#allocation6] sm:$0xff]  ;;  %v73_v34 = vld [vmem:[#allocation6 + $0x38] sm:$0xff] }
  0x3f   :  { %102 = vperm.xlu1 %1785, %v85_v4   ;;  %96 = vperm.xlu0 %1784, %v83_v5   ;;  %v151_v18 = vld [vmem:[#allocation3 + $0xa8] sm:$0xff]  ;;  %v148_v27 = vld [vmem:[#allocation3 + $0x80] sm:$0xff]  ;;  %v2065_v31 = vpack.c.bf16 %v68_v25, %v66_v24  ;;  %v72_v37 = vld [vmem:[#allocation6 + $0x30] sm:$0xff]  ;;  %p1931_p13 = por %p1930_p12, %p1929_p11 }
  0x40   :  { %v87_v19 = vld [vmem:[%s2347_s0 + $0x28] sm:$0xff]  ;;  %1580 = vmatpush1.bf16.msra.mxu1 %v1579_v11  ;;  %v1585_v26 = vpack.c.bf16 %v151_v18, %v149_v17  ;;  %v150_v28 = vld [vmem:[#allocation3 + $0xa0] sm:$0xff]  ;;  %v77_v41 = vld [vmem:[#allocation6 + $0x58] sm:$0xff] }
  0x41   :  { %v67_v21 = vld [vmem:[#allocation6 + $0x8] sm:$0xff]  ;;  %1582 = vmatprep.subr.bf16.mxu1 %v1581_v15  ;;  %v1587_v35 = vpack.c.bf16 %v150_v28, %v148_v27  ;;  %v70_v36 = vld [vmem:[#allocation6 + $0x20] sm:$0xff]  ;;  %v76_v44 = vld [vmem:[#allocation6 + $0x50] sm:$0xff]  ;;  %p1932_p0 = pnand %p1931_p13, %p1925_p10 }
  0x42   :  { %v2060_v29 = vpack.c.bf16 %v69_v23, %v67_v21  ;;  %v71_v33 = vld [vmem:[#allocation6 + $0x28] sm:$0xff]  ;;  %v2074_v39 = vpack.c.bf16 %v72_v37, %v70_v36  ;;  %v74_v43 = vld [vmem:[#allocation6 + $0x40] sm:$0xff]  ;;  %v81_v47 = vld [vmem:[#allocation6 + $0x78] sm:$0xff] }
  0x43   :  { %108 = vperm.xlu1 %1785, %v87_v19   ;;  %105 = vperm.xlu0 %1784, %v86_v20   ;;  %v2072_v38 = vpack.c.bf16 %v73_v34, %v71_v33  ;;  %v75_v40 = vld [vmem:[#allocation6 + $0x48] sm:$0xff]  ;;  %v2082_v45 = vpack.c.bf16 %v76_v44, %v74_v43  ;;  %v78_v49 = vld [vmem:[#allocation6 + $0x60] sm:$0xff]  ;;  %v80_v50 = vld [vmem:[#allocation6 + $0x70] sm:$0xff] }
  0x44   :  { %1622 = vmatprep.subr.bf16.mxu0 %v2060_v29  ;;  %1584 = vmatpush1.bf16.msra.mxu1 %v1583_v22  ;;  %v2079_v42 = vpack.c.bf16 %v77_v41, %v75_v40  ;;  %v79_v46 = vld [vmem:[#allocation6 + $0x68] sm:$0xff]  ;;  %v2088_v51 = vpack.c.bf16 %v80_v50, %v78_v49  ;;  %v2163_v22 = vld [vmem:[%s2348_s1] sm:$0xff]  ;;  %v1205_v36 = vld [vmem:[#allocation3 + $0x38] sm:$0xff] }
  0x45   :  { %1624 = vmatpush1.bf16.msra.mxu0 %v2065_v31  ;;  %1586 = vmatprep.subr.bf16.mxu1 %v1585_v26  ;;  %v2085_v48 = vpack.c.bf16 %v81_v47, %v79_v46  ;;  %vm411_vm9 = vcmp.gt.s32.totalorder %v2163_v22, 0  ;;  %v1202_v47 = vld [vmem:[#allocation3 + $0x10] sm:$0xff]  ;;  %vm523_vm12 = vcmp.gt.s32.totalorder %v2163_v22, 1  ;;  %vm635_vm14 = vcmp.gt.s32.totalorder %v2163_v22, 2 }
  0x46   :  { %1626 = vmatprep.subr.bf16.mxu0 %v2072_v38  ;;  %v412_v24 = vsel %vm411_vm9, 1, %v1961_v0  ;;  %v1204_v49 = vld [vmem:[#allocation3 + $0x30] sm:$0xff]  ;;  %vm1301_vm9 = vcmp.ge.s32.totalorder %v2163_v22, 8 }
  0x47   :  { %114 = vperm.xlu1 %1785, %v89_v30   ;;  %111 = vperm.xlu0 %1784, %v88_v32  }
  0x48   :  { %1588 = vmatpush1.bf16.msra.mxu1 %v1587_v35  ;;  %v1203_v35 = vld [vmem:[#allocation3 + $0x18] sm:$0xff] }
  0x49   :  { %1628 = vmatpush1.bf16.msra.mxu0 %v2074_v39  ;;  %1590 = vmatprep.subr.bf16.mxu1 %v2060_v29  ;;  %v1717_v40 = vpack.c.bf16 %v1205_v36, %v1203_v35 }
  0x4a   :  { %1630 = vmatprep.subr.bf16.mxu0 %v2079_v42 }
  0x4d   :  { %1632 = vmatpush1.bf16.msra.mxu0 %v2082_v45 }
  0x4e   :  { %1634 = vmatprep.subr.bf16.mxu0 %v2085_v48 }
  0x51   :  { %1636 = vmatpush1.bf16.msra.mxu0 %v2088_v51 }
  0x52   :  { %1638 = vmatprep.subr.bf16.mxu0 %v2060_v29 }
  0xba   :  { %v94_v54 = vpop.permute.xlu0 %93  ;;  %v100_v56 = vpop.permute.xlu1 %99 }
  0xbb   :  { %vm116_vm1 = vcmp.eq.s32.totalorder %v94_v54, %v91_v53  ;;  %vm118_vm2 = vcmp.eq.s32.totalorder %v100_v56, %v91_v53  ;;  %v1209_v54 = vld [vmem:[#allocation3 + $0x78] sm:$0xff] }
  0xbc   :  { %v1494_v55 = vsel %vm116_vm1, 1.0, %v1962_v1  ;;  %v1496_v59 = vsel %vm118_vm2, 1.0, %v1962_v1  ;;  %vm859_vm2 = vcmp.gt.s32.totalorder %v2163_v22, 4 }
  0xbd   :  { %1502 = vmatmul.mubr.msk.f32.vlgmr.msra.gmra.mrb[0].mxu1 %vm152_vm0, %v1494_v55 }
  0xbe   :  { %1592 = vmatpush1.bf16.msra.mxu1 %v2065_v31  ;;  %v97_v57 = vpop.permute.xlu0 %96  ;;  %247 = vmatprep.mubr.f32.mxu1 %v1962_v1  ;;  %v103_v60 = vpop.permute.xlu1 %102 }
  0xbf   :  { %vm117_vm3 = vcmp.eq.s32.totalorder %v97_v57, %v91_v53  ;;  %1594 = vmatprep.subr.bf16.mxu1 %v2072_v38  ;;  %vm119_vm4 = vcmp.eq.s32.totalorder %v103_v60, %v91_v53  ;;  %v1719_v57 = vpack.c.bf16 %v1204_v49, %v1202_v47  ;;  %v1208_v60 = vld [vmem:[#allocation3 + $0x70] sm:$0xff] }
  0xc0   :  { %v1495_v58 = vsel %vm117_vm3, 1.0, %v1962_v1  ;;  %v1497_v62 = vsel %vm119_vm4, 1.0, %v1962_v1  ;;  %vm971_vm4 = vcmp.gt.s32.totalorder %v2163_v22, 5 }
  0xc1   :  { %1503 = vmatmul.mubr.msk.f32.gmra.mrb[2].mxu1 %vm152_vm0, %v1495_v58 }
  0xc2   :  { %253 = vmatprep.mubr.f32.mxu1 %v1962_v1  ;;  %1596 = vmatpush1.bf16.msra.mxu1 %v2074_v39  ;;  %v106_v61 = vpop.permute.xlu0 %105  ;;  %v109_v63 = vpop.permute.xlu1 %108 }
  0xc3   :  { %1598 = vmatprep.subr.bf16.mxu1 %v2079_v42  ;;  %vm120_vm5 = vcmp.eq.s32.totalorder %v106_v61, %v91_v53  ;;  %vm121_vm6 = vcmp.eq.s32.totalorder %v109_v63, %v91_v53  ;;  %v1213_v63 = vld [vmem:[#allocation3 + $0xb8] sm:$0xff] }
  0xc4   :  { %v1498_v2 = vsel %vm120_vm5, 1.0, %v1962_v1  ;;  %v1499_v4 = vsel %vm121_vm6, 1.0, %v1962_v1  ;;  %vm1083_vm6 = vcmp.gt.s32.totalorder %v2163_v22, 6 }
  0xc5   :  { %1504 = vmatmul.mubr.msk.f32.gmra.mrb[4].mxu1 %vm152_vm0, %v1496_v59  ;;  %v1206_v59 = vld [vmem:[#allocation3 + $0x50] sm:$0xff] }
  0xc6   :  { %259 = vmatprep.mubr.f32.mxu1 %v1962_v1  ;;  %1600 = vmatpush1.bf16.msra.mxu1 %v2082_v45  ;;  %v112_v3 = vpop.permute.xlu0 %111  ;;  %v115_v5 = vpop.permute.xlu1 %114 }
  0xc7   :  { %1602 = vmatprep.subr.bf16.mxu1 %v2085_v48  ;;  %vm122_vm7 = vcmp.eq.s32.totalorder %v112_v3, %v91_v53  ;;  %vm123_vm8 = vcmp.eq.s32.totalorder %v115_v5, %v91_v53  ;;  %v1207_v53 = vld [vmem:[#allocation3 + $0x58] sm:$0xff]  ;;  %v1212_v5 = vld [vmem:[#allocation3 + $0xb0] sm:$0xff] }
  0xc8   :  { %v1500_v6 = vsel %vm122_vm7, 1.0, %v1962_v1  ;;  %v2122_v7 = vsel %vm123_vm8, 1.0, %v1962_v1  ;;  %v1721_v58 = vpack.c.bf16 %v1209_v54, %v1207_v53  ;;  %vm1195_vm8 = vcmp.gt.s32.totalorder %v2163_v22, 7 }
  0xc9   :  { %1505 = vmatmul.mubr.msk.f32.gmra.mrb[6].mxu1 %vm152_vm0, %v1497_v62  ;;  %v1211_v62 = vld [vmem:[#allocation3 + $0x98] sm:$0xff] }
  0xca   :  { %265 = vmatprep.mubr.f32.mxu1 %v1962_v1  ;;  %1604 = vmatpush1.bf16.msra.mxu1 %v2088_v51  ;;  %v1725_v3 = vpack.c.bf16 %v1213_v63, %v1211_v62 }
  0xcb   :  { %1606 = vmatprep.subr.bf16.mxu1 %v2060_v29 }
  0xcd   :  { %1506 = vmatmul.mubr.msk.f32.gmra.mrb[8].mxu1 %vm152_vm0, %v1498_v2  ;;  %v1723_v2 = vpack.c.bf16 %v1208_v60, %v1206_v59 }
  0xce   :  { %271 = vmatprep.mubr.f32.mxu1 %v1962_v1 }
  0xd1   :  { %1507 = vmatmul.mubr.msk.f32.gmra.mrb[10].mxu1 %vm152_vm0, %v1499_v4  ;;  %v1210_v4 = vld [vmem:[#allocation3 + $0x90] sm:$0xff] }
  0xd2   :  { %277 = vmatprep.mubr.f32.mxu1 %v1962_v1 }
  0xd5   :  { %1508 = vmatmul.mubr.msk.f32.gmra.mrb[12].mxu1 %vm152_vm0, %v1500_v6  ;;  %v1727_v6 = vpack.c.bf16 %v1212_v5, %v1210_v4 }
  0xd6   :  { %283 = vmatprep.mubr.f32.mxu1 %v1962_v1 }
  0xd9   :  { %1509 = vmatmul.mubr.msk.f32.gmra.mrb[14].mxu1 %vm152_vm0, %v2122_v7 }
  0xda   :  { %376 = vmatprep.mubr.f32.mxu1 %v1962_v1 }
  0xdd   :  { %377 = vmatmul.mubr.f32.vlgmr.msra.gmra.mrb[0].mxu1 %v1962_v1 }
  0xde   :  { %1608 = vmatpush1.bf16.msra.mxu1 %v2065_v31  ;;  %488 = vmatprep.mubr.f32.mxu1 %v1962_v1 }
  0xdf   :  { %1610 = vmatprep.subr.bf16.mxu1 %v2072_v38 }
  0xe2   :  { %1612 = vmatpush1.bf16.msra.mxu1 %v2074_v39 }
  0xe3   :  { %1614 = vmatprep.subr.bf16.mxu1 %v2079_v42 }
  0xe6   :  { %1616 = vmatpush1.bf16.msra.mxu1 %v2082_v45 }
  0xe7   :  { %1618 = vmatprep.subr.bf16.mxu1 %v2085_v48 }
  0xea   :  { %1620 = vmatpush1.bf16.msra.mxu1 %v2088_v51 }
  0xeb   :  { %1718 = vmatprep.subr.bf16.mxu1 %v1717_v40 }
 0x198   :  { %v2136_v8 = vpop.f32.mrb[4].mxu1 }
 0x199   :  { %v2138_v9 = vpop.f32.mrb[5].mxu1 }
 0x19c   :  { %v2140_v10 = vpop.f32.mrb[6].mxu1 }
 0x19d   :  { %v2142_v11 = vpop.f32.mrb[7].mxu1 }
 0x1a0   :  { %v2144_v12 = vpop.f32.mrb[8].mxu1 }
 0x1a1   :  { %v2146_v13 = vpop.f32.mrb[9].mxu1 }
 0x1a4   :  { %v2148_v14 = vpop.f32.mrb[10].mxu1 }
 0x1a5   :  { %v2150_v15 = vpop.f32.mrb[11].mxu1 }
 0x1a8   :  { %v2152_v16 = vpop.f32.mrb[12].mxu1 }
 0x1a9   :  { %v2154_v17 = vpop.f32.mrb[13].mxu1 }
 0x1ac   :  { %v2156_v18 = vpop.f32.mrb[14].mxu1 }
 0x1ad   :  { %v2158_v19 = vpop.f32.mrb[15].mxu1 }
 0x1b0   :  { %v378_v20 = vpop.f32.mrb[0].mxu1 }
 0x1b1   :  { %v380_v21 = vpop.f32.mrb[1].mxu1  ;;  %v385_v25 = vmul.f32 0.5, %v378_v20 }
 0x1b2   :  { %1786 = vtanh.f32 %v380_v21  ;;  %v389_v43 = vmul.f32 0.5, %v380_v21 }
 0x1b3   :  { %1788 = vtanh.f32 %v385_v25 }
 0x1bc   :  { %v1787_v23 = vpop.eup %1786 }
 0x1bd   :  { %396 = vrot.lane.b32.xlu0 %v1787_v23, %s1963_s28  ;;  %v1789_v26 = vpop.eup %1788 }
 0x1be   :  { %v387_v27 = vmul.f32 0.5, %v1789_v26  ;;  %v524_v26 = vsel %vm523_vm12, 1, %v1961_v0 }
 0x1c0   :  { %v388_v28 = vadd.f32 0.5, %v387_v27 }
 0x1c1   :  { %414 = vperm.xlu0 %1784, %v412_v24  }
 0x1c2   :  { %v394_v33 = vmul.f32 0.0, %v388_v28 }
 0x22f   :  { %v397_v30 = vpop.permute.xlu0 %396 }
 0x230   :  { %v399_v32 = vmul.f32 %v397_v30, %v388_v28 }
 0x232   :  { %401 = vrot.lane.b32.xlu1 %v399_v32, %s1963_s28 }
 0x240   :  { %v415_v50 = vpop.permute.xlu0 %414 }
 0x241   :  { %vm416_vm11 = vcmp.eq.s32.totalorder %v415_v50, 1 }
 0x2a4   :  { %v402_v34 = vpop.permute.xlu1 %401 }
 0x2a5   :  { %v404_v37 = vadd.f32 %v402_v34, %v394_v33 }
 0x2a7   :  { %1790 = vtanh.f32 %v404_v37  ;;  %v418_v34 = vsel %vm416_vm11, %v404_v37, 0.0 }
 0x2a8   :  { %1792 = vtanh.f32 %v389_v43 }
 0x2b1   :  { %v1791_v41 = vpop.eup %1790 }
 0x2b2   :  { %407 = vrot.lane.b32.xlu1 %v1791_v41, %s1963_s28  ;;  %v1793_v44 = vpop.eup %1792 }
 0x2b3   :  { %v391_v46 = vmul.f32 0.5, %v1793_v44 }
 0x2b5   :  { %v392_v52 = vadd.f32 0.5, %v391_v46 }
 0x324   :  { %v408_v55 = vpop.permute.xlu1 %407 }
 0x325   :  { %v410_v56 = vmul.f32 %v408_v55, %v392_v52 }
 0x327   :  { %v417_v61 = vsel %vm416_vm11, %v410_v56, 0.0  ;;  %vm1965_vm11 = vmmov 0  }
 0x328   :  { %1510 = vmatmul.mubr.msk.f32.vlgmr.msra.gmra.mrb[2].mxu1 %vm308_vm10, %v417_v61 }
 0x329   :  { %1720 = vmatpush1.bf16.msra.mxu1 %v1719_v57  ;;  %1278 = vmatprep.mubr.f32.mxu1 %v1962_v1 }
 0x32a   :  { %1722 = vmatprep.subr.bf16.mxu1 %v1721_v58  ;;  %v636_v58 = vsel %vm635_vm14, 1, %v1961_v0 }
 0x32d   :  { %1724 = vmatpush1.bf16.msra.mxu1 %v1723_v2 }
 0x32e   :  { %1726 = vmatprep.subr.bf16.mxu1 %v1725_v3 }
 0x331   :  { %1728 = vmatpush1.bf16.msra.mxu1 %v1727_v6 }
 0x334   :  { %1517 = vmatmul.mubr.msk.f32.vlgmr.msra.gmra.mrb[16].mxu1 %vm152_vm0, %v2122_v7  ;;  %vm747_vm0 = vcmp.gt.s32.totalorder %v2163_v22, 3 }
 0x335   :  { %1555 = vmatprep.mubr.msk.f32.mxu1 %vm1965_vm11, %v1962_v1 }
 0x3fb   :  { %v490_v20 = vpop.f32.mrb[2].mxu1 }
 0x3fc   :  { %v492_v21 = vpop.f32.mrb[3].mxu1  ;;  %v497_v27 = vmul.f32 0.5, %v490_v20 }
 0x3fd   :  { %1794 = vtanh.f32 %v492_v21  ;;  %v501_v43 = vmul.f32 0.5, %v492_v21 }
 0x3fe   :  { %1796 = vtanh.f32 %v497_v27 }
 0x407   :  { %v1795_v23 = vpop.eup %1794  ;;  %v2176_v24 = vpop.f32.mrb[16].mxu1 }
 0x408   :  { %v2178_v25 = vpop.f32.mrb[17].mxu1  ;;  %508 = vrot.lane.b32.xlu0 %v1795_v23, %s1963_s28  ;;  %v1797_v28 = vpop.eup %1796 }
 0x409   :  { %v499_v30 = vmul.f32 0.5, %v1797_v28 }
 0x40b   :  { %v500_v7 = vadd.f32 0.5, %v499_v30 }
 0x40c   :  { %526 = vperm.xlu0 %1784, %v524_v26  }
 0x40d   :  { %v506_v35 = vmul.f32 %v500_v7, %v418_v34 }
 0x47a   :  { %v509_v32 = vpop.permute.xlu0 %508 }
 0x47b   :  { %v511_v33 = vmul.f32 %v509_v32, %v500_v7 }
 0x47d   :  { %513 = vrot.lane.b32.xlu1 %v511_v33, %s1963_s28 }
 0x48b   :  { %v527_v47 = vpop.permute.xlu0 %526 }
 0x48c   :  { %vm528_vm13 = vcmp.eq.s32.totalorder %v527_v47, 1 }
 0x4ef   :  { %v514_v36 = vpop.permute.xlu1 %513 }
 0x4f0   :  { %v516_v40 = vadd.f32 %v514_v36, %v506_v35  ;;  %v748_v36 = vsel %vm747_vm0, 1, %v1961_v0 }
 0x4f2   :  { %1798 = vtanh.f32 %v516_v40 }
 0x4f3   :  { %1800 = vtanh.f32 %v501_v43 }
 0x4fc   :  { %v1799_v41 = vpop.eup %1798 }
 0x4fd   :  { %519 = vrot.lane.b32.xlu1 %v1799_v41, %s1963_s28  ;;  %v1801_v44 = vpop.eup %1800 }
 0x4fe   :  { %v503_v46 = vmul.f32 0.5, %v1801_v44 }
 0x500   :  { %v504_v49 = vadd.f32 0.5, %v503_v46 }
 0x56f   :  { %v520_v52 = vpop.permute.xlu1 %519 }
 0x570   :  { %v522_v53 = vmul.f32 %v520_v52, %v504_v49 }
 0x572   :  { %v529_v54 = vsel %vm528_vm13, %v522_v53, %v417_v61 }
 0x573   :  { %1511 = vmatmul.mubr.msk.f32.vlgmr.msra.gmra.mrb[0].mxu0 %vm308_vm10, %v529_v54 }
 0x574   :  { %1640 = vmatpush1.bf16.msra.mxu0 %v2065_v31  ;;  %712 = vmatprep.mubr.f32.mxu0 %v1962_v1 }
 0x575   :  { %1642 = vmatprep.subr.bf16.mxu0 %v2072_v38 }
 0x578   :  { %1644 = vmatpush1.bf16.msra.mxu0 %v2074_v39 }
 0x579   :  { %1646 = vmatprep.subr.bf16.mxu0 %v2079_v42 }
 0x57c   :  { %1648 = vmatpush1.bf16.msra.mxu0 %v2082_v45 }
 0x57d   :  { %1650 = vmatprep.subr.bf16.mxu0 %v2085_v48 }
 0x580   :  { %1652 = vmatpush1.bf16.msra.mxu0 %v2088_v51 }
 0x581   :  { %1654 = vmatprep.subr.bf16.mxu0 %v2060_v29 }
 0x646   :  { %v602_v37 = vpop.f32.mrb[0].mxu0 }
 0x647   :  { %v607_v50 = vadd.f32 %v602_v37, %v2136_v8  ;;  %v604_v55 = vpop.f32.mrb[1].mxu0  ;;  %v530_v8 = vsel %vm528_vm13, %v516_v40, %v418_v34 }
 0x648   :  { %v608_v56 = vadd.f32 %v604_v55, %v2138_v9 }
 0x649   :  { %v609_v59 = vmul.f32 0.5, %v607_v50 }
 0x64a   :  { %1802 = vtanh.f32 %v608_v56  ;;  %v613_v6 = vmul.f32 0.5, %v608_v56 }
 0x64b   :  { %1804 = vtanh.f32 %v609_v59 }
 0x654   :  { %v1803_v57 = vpop.eup %1802 }
 0x655   :  { %620 = vrot.lane.b32.xlu0 %v1803_v57, %s1963_s28  ;;  %v1805_v60 = vpop.eup %1804 }
 0x656   :  { %v611_v61 = vmul.f32 0.5, %v1805_v60 }
 0x658   :  { %v612_v62 = vadd.f32 0.5, %v611_v61 }
 0x659   :  { %638 = vperm.xlu0 %1784, %v636_v58  }
 0x65a   :  { %v618_v9 = vmul.f32 %v612_v62, %v530_v8 }
 0x6c7   :  { %v621_v63 = vpop.permute.xlu0 %620 }
 0x6c8   :  { %v623_v2 = vmul.f32 %v621_v63, %v612_v62 }
 0x6ca   :  { %625 = vrot.lane.b32.xlu1 %v623_v2, %s1963_s28 }
 0x6d8   :  { %v639_v23 = vpop.permute.xlu0 %638 }
 0x6d9   :  { %vm640_vm15 = vcmp.eq.s32.totalorder %v639_v23, 1 }
 0x73c   :  { %v626_v3 = vpop.permute.xlu1 %625 }
 0x73d   :  { %v628_v4 = vadd.f32 %v626_v3, %v618_v9 }
 0x73f   :  { %1806 = vtanh.f32 %v628_v4 }
 0x740   :  { %1808 = vtanh.f32 %v613_v6 }
 0x749   :  { %v1807_v5 = vpop.eup %1806 }
 0x74a   :  { %631 = vrot.lane.b32.xlu1 %v1807_v5, %s1963_s28  ;;  %v1809_v20 = vpop.eup %1808 }
 0x74b   :  { %v615_v21 = vmul.f32 0.5, %v1809_v20 }
 0x74d   :  { %v616_v26 = vadd.f32 0.5, %v615_v21 }
 0x7bc   :  { %v632_v27 = vpop.permute.xlu1 %631 }
 0x7bd   :  { %v634_v28 = vmul.f32 %v632_v27, %v616_v26 }
 0x7bf   :  { %v641_v30 = vsel %vm640_vm15, %v634_v28, %v529_v54 }
 0x7c0   :  { %1512 = vmatmul.mubr.msk.f32.vlgmr.msra.gmra.mrb[2].mxu0 %vm308_vm10, %v641_v30 }
 0x7c1   :  { %1656 = vmatpush1.bf16.msra.mxu0 %v2065_v31  ;;  %824 = vmatprep.mubr.f32.mxu0 %v1962_v1 }
 0x7c2   :  { %1658 = vmatprep.subr.bf16.mxu0 %v2072_v38 }
 0x7c5   :  { %1660 = vmatpush1.bf16.msra.mxu0 %v2074_v39 }
 0x7c6   :  { %1662 = vmatprep.subr.bf16.mxu0 %v2079_v42 }
 0x7c9   :  { %1664 = vmatpush1.bf16.msra.mxu0 %v2082_v45 }
 0x7ca   :  { %1666 = vmatprep.subr.bf16.mxu0 %v2085_v48 }
 0x7cd   :  { %1668 = vmatpush1.bf16.msra.mxu0 %v2088_v51 }
 0x7ce   :  { %1670 = vmatprep.subr.bf16.mxu0 %v2060_v29 }
 0x893   :  { %v714_v7 = vpop.f32.mrb[2].mxu0 }
 0x894   :  { %v719_v32 = vadd.f32 %v714_v7, %v2140_v10  ;;  %v716_v33 = vpop.f32.mrb[3].mxu0  ;;  %v642_v10 = vsel %vm640_vm15, %v628_v4, %v530_v8  ;;  %v860_v8 = vsel %vm859_vm2, 1, %v1961_v0 }
 0x895   :  { %v720_v34 = vadd.f32 %v716_v33, %v2142_v11 }
 0x896   :  { %v721_v40 = vmul.f32 0.5, %v719_v32 }
 0x897   :  { %1810 = vtanh.f32 %v720_v34  ;;  %v725_v54 = vmul.f32 0.5, %v720_v34 }
 0x898   :  { %1812 = vtanh.f32 %v721_v40 }
 0x8a1   :  { %v1811_v35 = vpop.eup %1810 }
 0x8a2   :  { %732 = vrot.lane.b32.xlu0 %v1811_v35, %s1963_s28  ;;  %v1813_v41 = vpop.eup %1812 }
 0x8a3   :  { %v723_v43 = vmul.f32 0.5, %v1813_v41 }
 0x8a5   :  { %v724_v44 = vadd.f32 0.5, %v723_v43 }
 0x8a6   :  { %750 = vperm.xlu0 %1784, %v748_v36  }
 0x8a7   :  { %v730_v11 = vmul.f32 %v724_v44, %v642_v10 }
 0x914   :  { %v733_v46 = vpop.permute.xlu0 %732 }
 0x915   :  { %v735_v47 = vmul.f32 %v733_v46, %v724_v44  ;;  %v972_v46 = vsel %vm971_vm4, 1, %v1961_v0 }
 0x917   :  { %737 = vrot.lane.b32.xlu1 %v735_v47, %s1963_s28 }
 0x925   :  { %v751_v55 = vpop.permute.xlu0 %750 }
 0x926   :  { %vm752_vm1 = vcmp.eq.s32.totalorder %v751_v55, 1 }
 0x989   :  { %v738_v49 = vpop.permute.xlu1 %737 }
 0x98a   :  { %v740_v52 = vadd.f32 %v738_v49, %v730_v11 }
 0x98c   :  { %1814 = vtanh.f32 %v740_v52 }
 0x98d   :  { %1816 = vtanh.f32 %v725_v54 }
 0x996   :  { %v1815_v53 = vpop.eup %1814 }
 0x997   :  { %743 = vrot.lane.b32.xlu1 %v1815_v53, %s1963_s28  ;;  %v1817_v37 = vpop.eup %1816 }
 0x998   :  { %v727_v50 = vmul.f32 0.5, %v1817_v37 }
 0x99a   :  { %v728_v56 = vadd.f32 0.5, %v727_v50 }
 0xa09   :  { %v744_v57 = vpop.permute.xlu1 %743 }
 0xa0a   :  { %v746_v58 = vmul.f32 %v744_v57, %v728_v56 }
 0xa0c   :  { %v753_v59 = vsel %vm752_vm1, %v746_v58, %v641_v30 }
 0xa0d   :  { %1513 = vmatmul.mubr.msk.f32.vlgmr.msra.gmra.mrb[4].mxu0 %vm308_vm10, %v753_v59 }
 0xa0e   :  { %1672 = vmatpush1.bf16.msra.mxu0 %v2065_v31  ;;  %936 = vmatprep.mubr.f32.mxu0 %v1962_v1 }
 0xa0f   :  { %1674 = vmatprep.subr.bf16.mxu0 %v2072_v38 }
 0xa12   :  { %1676 = vmatpush1.bf16.msra.mxu0 %v2074_v39 }
 0xa13   :  { %1678 = vmatprep.subr.bf16.mxu0 %v2079_v42 }
 0xa16   :  { %1680 = vmatpush1.bf16.msra.mxu0 %v2082_v45 }
 0xa17   :  { %1682 = vmatprep.subr.bf16.mxu0 %v2085_v48 }
 0xa1a   :  { %1684 = vmatpush1.bf16.msra.mxu0 %v2088_v51 }
 0xa1b   :  { %1686 = vmatprep.subr.bf16.mxu0 %v2060_v29 }
 0xae0   :  { %v826_v60 = vpop.f32.mrb[4].mxu0 }
 0xae1   :  { %v831_v61 = vadd.f32 %v826_v60, %v2144_v12  ;;  %v828_v62 = vpop.f32.mrb[5].mxu0  ;;  %v754_v12 = vsel %vm752_vm1, %v740_v52, %v642_v10 }
 0xae2   :  { %v832_v63 = vadd.f32 %v828_v62, %v2146_v13 }
 0xae3   :  { %v833_v9 = vmul.f32 0.5, %v831_v61 }
 0xae4   :  { %1818 = vtanh.f32 %v832_v63  ;;  %v837_v27 = vmul.f32 0.5, %v832_v63 }
 0xae5   :  { %1820 = vtanh.f32 %v833_v9 }
 0xaee   :  { %v1819_v2 = vpop.eup %1818 }
 0xaef   :  { %844 = vrot.lane.b32.xlu0 %v1819_v2, %s1963_s28  ;;  %v1821_v3 = vpop.eup %1820 }
 0xaf0   :  { %v835_v4 = vmul.f32 0.5, %v1821_v3 }
 0xaf2   :  { %v836_v5 = vadd.f32 0.5, %v835_v4 }
 0xaf3   :  { %862 = vperm.xlu0 %1784, %v860_v8  }
 0xaf4   :  { %v842_v13 = vmul.f32 %v836_v5, %v754_v12 }
 0xb61   :  { %v845_v6 = vpop.permute.xlu0 %844 }
 0xb62   :  { %v847_v20 = vmul.f32 %v845_v6, %v836_v5 }
 0xb64   :  { %849 = vrot.lane.b32.xlu1 %v847_v20, %s1963_s28 }
 0xb72   :  { %v863_v7 = vpop.permute.xlu0 %862 }
 0xb73   :  { %vm864_vm3 = vcmp.eq.s32.totalorder %v863_v7, 1 }
 0xbd6   :  { %v850_v21 = vpop.permute.xlu1 %849 }
 0xbd7   :  { %v852_v23 = vadd.f32 %v850_v21, %v842_v13 }
 0xbd9   :  { %1822 = vtanh.f32 %v852_v23 }
 0xbda   :  { %1824 = vtanh.f32 %v837_v27 }
 0xbe3   :  { %v1823_v26 = vpop.eup %1822 }
 0xbe4   :  { %855 = vrot.lane.b32.xlu1 %v1823_v26, %s1963_s28  ;;  %v1825_v28 = vpop.eup %1824 }
 0xbe5   :  { %v839_v30 = vmul.f32 0.5, %v1825_v28 }
 0xbe7   :  { %v840_v32 = vadd.f32 0.5, %v839_v30 }
 0xc56   :  { %v856_v33 = vpop.permute.xlu1 %855 }
 0xc57   :  { %v858_v34 = vmul.f32 %v856_v33, %v840_v32 }
 0xc59   :  { %v865_v35 = vsel %vm864_vm3, %v858_v34, %v753_v59 }
 0xc5a   :  { %1514 = vmatmul.mubr.msk.f32.vlgmr.msra.gmra.mrb[6].mxu0 %vm308_vm10, %v865_v35 }
 0xc5b   :  { %1688 = vmatpush1.bf16.msra.mxu0 %v2065_v31  ;;  %1048 = vmatprep.mubr.f32.mxu0 %v1962_v1 }
 0xc5c   :  { %1690 = vmatprep.subr.bf16.mxu0 %v2072_v38 }
 0xc5f   :  { %1692 = vmatpush1.bf16.msra.mxu0 %v2074_v39 }
 0xc60   :  { %1694 = vmatprep.subr.bf16.mxu0 %v2079_v42 }
 0xc63   :  { %1696 = vmatpush1.bf16.msra.mxu0 %v2082_v45 }
 0xc64   :  { %1698 = vmatprep.subr.bf16.mxu0 %v2085_v48 }
 0xc67   :  { %1700 = vmatpush1.bf16.msra.mxu0 %v2088_v51 }
 0xc68   :  { %1702 = vmatprep.subr.bf16.mxu0 %v2060_v29 }
 0xd2d   :  { %v938_v36 = vpop.f32.mrb[6].mxu0 }
 0xd2e   :  { %v943_v40 = vadd.f32 %v938_v36, %v2148_v14  ;;  %v940_v41 = vpop.f32.mrb[7].mxu0  ;;  %v866_v14 = vsel %vm864_vm3, %v852_v23, %v754_v12  ;;  %v1285_v36 = vmul.f32 0.5, %v2176_v24  ;;  %v1321_v24 = vld [vmem:[#allocation8 + $0x60] sm:$0xff] }
 0xd2f   :  { %v944_v43 = vadd.f32 %v940_v41, %v2150_v15  ;;  %v1318_v41 = vld [vmem:[#allocation8 + $0x48] sm:$0xff] }
 0xd30   :  { %v945_v47 = vmul.f32 0.5, %v943_v40  ;;  %v1317_v40 = vld [vmem:[#allocation8 + $0x40] sm:$0xff] }
 0xd31   :  { %1826 = vtanh.f32 %v944_v43  ;;  %v949_v50 = vmul.f32 0.5, %v944_v43  ;;  %v1319_v43 = vld [vmem:[#allocation8 + $0x50] sm:$0xff] }
 0xd32   :  { %1828 = vtanh.f32 %v945_v47  ;;  %v1320_v47 = vld [vmem:[#allocation8 + $0x58] sm:$0xff] }
 0xd3b   :  { %v1827_v44 = vpop.eup %1826 }
 0xd3c   :  { %956 = vrot.lane.b32.xlu0 %v1827_v44, %s1963_s28  ;;  %v1829_v10 = vpop.eup %1828  ;;  %v1964_v44 = vmov 0.0|0.0  }
 0xd3d   :  { %v947_v11 = vmul.f32 0.5, %v1829_v10  ;;  %1729 = vmatprep.subr.bf16.mxu1 %v1964_v44  ;;  %v1289_v10 = vmul.f32 0.5, %v2178_v25 }
 0xd3f   :  { %v948_v29 = vadd.f32 0.5, %v947_v11 }
 0xd40   :  { %974 = vperm.xlu0 %1784, %v972_v46   ;;  %v1730_v46 = vpack.c.bf16 %v1318_v41, %v1317_v40 }
 0xd41   :  { %v954_v15 = vmul.f32 %v948_v29, %v866_v14 }
 0xd42   :  { %1731 = vmatpush3.bf16.msra.mxu1 %v1730_v46 }
 0xd43   :  { %1732 = vmatprep.subr.bf16.mxu1 %v1964_v44 }
 0xdae   :  { %v957_v49 = vpop.permute.xlu0 %956 }
 0xdaf   :  { %v959_v52 = vmul.f32 %v957_v49, %v948_v29  ;;  %v1733_v29 = vpack.c.bf16 %v1320_v47, %v1319_v43 }
 0xdb1   :  { %961 = vrot.lane.b32.xlu1 %v959_v52, %s1963_s28  ;;  %v1322_v52 = vld [vmem:[#allocation8 + $0x68] sm:$0xff]  ;;  %1734 = vmatpush3.bf16.msra.mxu1 %v1733_v29 }
 0xdb2   :  { %1735 = vmatprep.subr.bf16.mxu1 %v1964_v44 }
 0xdbf   :  { %v975_v57 = vpop.permute.xlu0 %974 }
 0xdc0   :  { %vm976_vm5 = vcmp.eq.s32.totalorder %v975_v57, 1  ;;  %v1302_v57 = vsel %vm1301_vm9, 1, %v1961_v0 }
 0xe23   :  { %v962_v53 = vpop.permute.xlu1 %961 }
 0xe24   :  { %v964_v54 = vadd.f32 %v962_v53, %v954_v15  ;;  %v1736_v53 = vpack.c.bf16 %v1322_v52, %v1321_v24 }
 0xe26   :  { %1830 = vtanh.f32 %v964_v54  ;;  %1737 = vmatpush3.bf16.msra.mxu1 %v1736_v53 }
 0xe27   :  { %1832 = vtanh.f32 %v949_v50  ;;  %v1323_v50 = vld [vmem:[#allocation8 + $0x70] sm:$0xff]  ;;  %1738 = vmatprep.subr.bf16.mxu1 %v1964_v44 }
 0xe30   :  { %v1831_v37 = vpop.eup %1830 }
 0xe31   :  { %967 = vrot.lane.b32.xlu1 %v1831_v37, %s1963_s28  ;;  %v1833_v55 = vpop.eup %1832 }
 0xe32   :  { %v951_v56 = vmul.f32 0.5, %v1833_v55  ;;  %v1324_v55 = vld [vmem:[#allocation8 + $0x78] sm:$0xff] }
 0xe34   :  { %v952_v58 = vadd.f32 0.5, %v951_v56 }
 0xea3   :  { %v968_v59 = vpop.permute.xlu1 %967 }
 0xea4   :  { %v970_v60 = vmul.f32 %v968_v59, %v952_v58  ;;  %v1739_v58 = vpack.c.bf16 %v1324_v55, %v1323_v50 }
 0xea6   :  { %v977_v61 = vsel %vm976_vm5, %v970_v60, %v865_v35  ;;  %v1196_v35 = vsel %vm1195_vm8, 1, %v1961_v0  ;;  %1740 = vmatpush3.bf16.msra.mxu1 %v1739_v58 }
 0xea7   :  { %1515 = vmatmul.mubr.msk.f32.vlgmr.msra.gmra.mrb[8].mxu0 %vm308_vm10, %v977_v61  ;;  %1741 = vmatprep.subr.bf16.mxu1 %v1964_v44 }
 0xea8   :  { %1704 = vmatpush1.bf16.msra.mxu0 %v2065_v31  ;;  %1160 = vmatprep.mubr.f32.mxu0 %v1962_v1 }
 0xea9   :  { %1706 = vmatprep.subr.bf16.mxu0 %v2072_v38 }
 0xeac   :  { %1708 = vmatpush1.bf16.msra.mxu0 %v2074_v39  ;;  %v1084_v39 = vsel %vm1083_vm6, 1, %v1961_v0 }
 0xead   :  { %1710 = vmatprep.subr.bf16.mxu0 %v2079_v42 }
 0xeb0   :  { %1712 = vmatpush1.bf16.msra.mxu0 %v2082_v45 }
 0xeb1   :  { %1714 = vmatprep.subr.bf16.mxu0 %v2085_v48 }
 0xeb4   :  { %1716 = vmatpush1.bf16.msra.mxu0 %v2088_v51 }
 0xf7a   :  { %v1050_v62 = vpop.f32.mrb[8].mxu0 }
 0xf7b   :  { %v1055_v63 = vadd.f32 %v1050_v62, %v2152_v16  ;;  %v1052_v2 = vpop.f32.mrb[9].mxu0  ;;  %v2278_v16 = vsel %vm976_vm5, %v964_v54, %v866_v14 }
 0xf7c   :  { %v1056_v31 = vadd.f32 %v1052_v2, %v2154_v17 }
 0xf7d   :  { %v1057_v42 = vmul.f32 0.5, %v1055_v63 }
 0xf7e   :  { %1834 = vtanh.f32 %v1056_v31  ;;  %v1061_v6 = vmul.f32 0.5, %v1056_v31 }
 0xf7f   :  { %1836 = vtanh.f32 %v1057_v42  ;;  %v1309_v42 = vld [vmem:[#allocation8] sm:$0xff] }
 0xf88   :  { %v1835_v38 = vpop.eup %1834 }
 0xf89   :  { %1068 = vrot.lane.b32.xlu0 %v1835_v38, %s1963_s28  ;;  %v1837_v45 = vpop.eup %1836 }
 0xf8a   :  { %v1059_v48 = vmul.f32 0.5, %v1837_v45  ;;  %v1310_v45 = vld [vmem:[#allocation8 + $0x8] sm:$0xff] }
 0xf8c   :  { %v1060_v51 = vadd.f32 0.5, %v1059_v48 }
 0xf8d   :  { %1086 = vperm.xlu0 %1784, %v1084_v39  }
 0xf8e   :  { %v1066_v17 = vmul.f32 %v1060_v51, %v2278_v16 }
 0xffb   :  { %v1069_v8 = vpop.permute.xlu0 %1068 }
 0xffc   :  { %v1071_v9 = vmul.f32 %v1069_v8, %v1060_v51  ;;  %v1742_v51 = vpack.c.bf16 %v1310_v45, %v1309_v42  ;;  %v1311_v8 = vld [vmem:[#allocation8 + $0x10] sm:$0xff] }
 0xffe   :  { %1073 = vrot.lane.b32.xlu1 %v1071_v9, %s1963_s28  ;;  %v1312_v9 = vld [vmem:[#allocation8 + $0x18] sm:$0xff] }
0x100c   :  { %v2285_v13 = vpop.permute.xlu0 %1086 }
0x100d   :  { %vm1088_vm7 = vcmp.eq.s32.totalorder %v2285_v13, 1 }
0x1070   :  { %v1074_v3 = vpop.permute.xlu1 %1073 }
0x1071   :  { %v2281_v4 = vadd.f32 %v1074_v3, %v1066_v17  ;;  %v1313_v3 = vld [vmem:[#allocation8 + $0x20] sm:$0xff] }
0x1073   :  { %1838 = vtanh.f32 %v2281_v4  ;;  %v1090_v0 = vsel %vm1088_vm7, %v2281_v4, %v2278_v16  ;;  %v1745_v16 = vpack.c.bf16 %v1312_v9, %v1311_v8  ;;  %v1314_v4 = vld [vmem:[#allocation8 + $0x28] sm:$0xff] }
0x1074   :  { %1840 = vtanh.f32 %v1061_v6  ;;  %v1315_v6 = vld [vmem:[#allocation8 + $0x30] sm:$0xff] }
0x107d   :  { %v1839_v5 = vpop.eup %1838 }
0x107e   :  { %1079 = vrot.lane.b32.xlu1 %v1839_v5, %s1963_s28  ;;  %v1841_v20 = vpop.eup %1840  ;;  %v1748_v5 = vpack.c.bf16 %v1314_v4, %v1313_v3 }
0x107f   :  { %v1063_v12 = vmul.f32 0.5, %v1841_v20  ;;  %v1316_v20 = vld [vmem:[#allocation8 + $0x38] sm:$0xff] }
0x1081   :  { %v1064_v21 = vadd.f32 0.5, %v1063_v12  ;;  %v1751_v12 = vpack.c.bf16 %v1316_v20, %v1315_v6 }
0x10f0   :  { %v1080_v23 = vpop.permute.xlu1 %1079 }
0x10f1   :  { %v1082_v26 = vmul.f32 %v1080_v23, %v1064_v21 }
0x10f3   :  { %v2290_v27 = vsel %vm1088_vm7, %v1082_v26, %v977_v61 }
0x10f4   :  { %1516 = vmatmul.mubr.msk.f32.vlgmr.msra.gmra.mrb[10].mxu0 %vm308_vm10, %v2290_v27 }
0x11c7   :  { %v1162_v28 = vpop.f32.mrb[10].mxu0 }
0x11c8   :  { %v1167_v30 = vadd.f32 %v1162_v28, %v2156_v18  ;;  %v1164_v7 = vpop.f32.mrb[11].mxu0 }
0x11c9   :  { %v2296_v32 = vadd.f32 %v1164_v7, %v2158_v19 }
0x11ca   :  { %v1169_v18 = vmul.f32 0.5, %v1167_v30 }
0x11cb   :  { %1842 = vtanh.f32 %v2296_v32  ;;  %v1173_v13 = vmul.f32 0.5, %v2296_v32  ;;  %v1520_v32 = vld [vmem:[%s2352_s5] ss:$0 sm:$0xff] }
0x11cc   :  { %1844 = vtanh.f32 %v2178_v25 }
0x11cd   :  { %1846 = vtanh.f32 %v1169_v18 }
0x11ce   :  { %1848 = vtanh.f32 %v1285_v36 }
0x11cf   :  { %1850 = vtanh.f32 %v1289_v10 }
0x11d5   :  { %v1843_v33 = vpop.eup %1842 }
0x11d6   :  { %1180 = vrot.lane.b32.xlu0 %v1843_v33, %s1963_s28  ;;  %v1845_v34 = vpop.eup %1844 }
0x11d7   :  { %v1847_v19 = vpop.eup %1846 }
0x11d8   :  { %v1171_v11 = vmul.f32 0.5, %v1847_v19  ;;  %v1849_v49 = vpop.eup %1848 }
0x11d9   :  { %v1287_v15 = vmul.f32 0.5, %v1849_v49  ;;  %v1851_v60 = vpop.eup %1850 }
0x11da   :  { %1295 = vrot.lane.b32.xlu0 %v1845_v34, %s1963_s28  ;;  %v1172_v14 = vadd.f32 0.5, %v1171_v11  ;;  %v1291_v22 = vmul.f32 0.5, %v1851_v60 }
0x11db   :  { %v1288_v25 = vadd.f32 0.5, %v1287_v15 }
0x11dc   :  { %v1292_v61 = vadd.f32 0.5, %v1291_v22  ;;  %v1178_v2 = vmul.f32 %v1172_v14, %v1090_v0 }
0x11de   :  { %1198 = vperm.xlu0 %1784, %v1196_v35  }
0x1248   :  { %v1181_v54 = vpop.permute.xlu0 %1180 }
0x1249   :  { %v1183_v37 = vmul.f32 %v1181_v54, %v1172_v14 }
0x124b   :  { %1185 = vrot.lane.b32.xlu1 %v1183_v37, %s1963_s28 }
0x124c   :  { %v1296_v56 = vpop.permute.xlu0 %1295 }
0x124d   :  { %v1298_v59 = vmul.f32 %v1296_v56, %v1288_v25 }
0x124f   :  { %1852 = vtanh.f32 %v1298_v59  ;;  %1304 = vperm.xlu1 %1785, %v1302_v57  }
0x1259   :  { %v1853_v62 = vpop.eup %1852 }
0x125a   :  { %v1300_v63 = vmul.f32 %v1853_v62, %v1292_v61 }
0x125d   :  { %v1199_v23 = vpop.permute.xlu0 %1198 }
0x125e   :  { %vm1200_vm13 = vcmp.eq.s32.totalorder %v1199_v23, 1 }
0x12bd   :  { %v1186_v31 = vpop.permute.xlu1 %1185 }
0x12be   :  { %v1188_v38 = vadd.f32 %v1186_v31, %v1178_v2 }
0x12c0   :  { %1854 = vtanh.f32 %v1188_v38 }
0x12c1   :  { %1856 = vtanh.f32 %v1173_v13 }
0x12ca   :  { %v1855_v39 = vpop.eup %1854 }
0x12cb   :  { %1191 = vrot.lane.b32.xlu1 %v1855_v39, %s1963_s28  ;;  %v1857_v21 = vpop.eup %1856 }
0x12ce   :  { %v1305_v48 = vpop.permute.xlu1 %1304 }
0x12cf   :  { %vm1306_vm12 = vcmp.eq.s32.totalorder %v1305_v48, 1 }
0x12d0   :  { %v1308_v17 = vsel %vm1306_vm12, %v1300_v63, 0.0 }
0x12d1   :  { %1556 = vmatmul.mubr.msk.f32.vlgmr.msra.gmra.mrb[18].mxu1 %vm308_vm10, %v1308_v17 }
0x12d2   :  { %1743 = vmatpush3.bf16.msra.mxu1 %v1742_v51  ;;  %1574 = vmatprep.mubr.msk.f32.mxu1 %vm1965_vm11, %v1962_v1  ;;  %v1175_v1 = vmul.f32 0.5, %v1857_v21 }
0x12d3   :  { %1744 = vmatprep.subr.bf16.mxu1 %v1964_v44 }
0x12d4   :  { %v1176_v26 = vadd.f32 0.5, %v1175_v1 }
0x12d6   :  { %1746 = vmatpush3.bf16.msra.mxu1 %v1745_v16 }
0x12d7   :  { %1747 = vmatprep.subr.bf16.mxu1 %v1964_v44 }
0x12da   :  { %1749 = vmatpush3.bf16.msra.mxu1 %v1748_v5 }
0x12db   :  { %1750 = vmatprep.subr.bf16.mxu1 %v1964_v44 }
0x12de   :  { %1752 = vmatpush3.bf16.msra.mxu1 %v1751_v12 }
0x133d   :  { %v1192_v28 = vpop.permute.xlu1 %1191 }
0x133e   :  { %v1194_v30 = vmul.f32 %v1192_v28, %v1176_v26 }
0x1340   :  { %v1201_v7 = vsel %vm1200_vm13, %v1194_v30, %v2290_v27 }
0x1341   :  { %v1307_v33 = vsel %vm1306_vm12, %v1201_v7, 0.0 }
0x1342   :  { %1575 = vmatmul.mubr.msk.f32.vlgmr.msra.gmra.mrb[20].mxu1 %vm308_vm10, %v1307_v33 }
0x13a4   :  { %v1394_v34 = vpop.f32.mrb[18].mxu1 }
0x13a5   :  { %v1557_v35 = vpop.f32.mrb[19].mxu1 }
0x1415   :  { %v1467_v18 = vpop.f32.mrb[20].mxu1 }
0x1416   :  { %v1468_v36 = vadd.f32 %v1467_v18, %v1394_v34  ;;  %v1576_v19 = vpop.f32.mrb[21].mxu1 }
0x1418   :  { %v1476_v40 = vadd.f32 %v1520_v32, %v1468_v36 }
0x141a   :  { %1477 = vst [vmem:[#allocation9] sm:$0xff] %v1476_v40 }
0x141b   :  { %1935 = shalt.err (!%p1932_p0)
}
0x141c   :  { %s1936_s10 = scalar_lea.hbm %s2353_s6, 128 }
0x141d   :  { %p1937_p1 = scmp.ne.s32.totalorder %s2353_s6, %s1936_s10  ;;  %p1940_p2 = scmp.lt.u32.totalorder %s1936_s10, %s2353_s6 }
0x141f   :  { %p1942_p3 = pnand %p1940_p2, %p1937_p1 }
0x1421   :  { %1945 = shalt.err (!%p1942_p3)
}
0x1422   :  { %1487 = dma.vmem_to_hbm [thread:$0]  %s1485_s7, 128, %s2353_s6, [#allocation5]  }
0x1423   :  { %1950 = dma.done.wait [#allocation5], 128  }
0x1424   :  { %1951 = vsyncadd [#allocation5], 4294967168 }
0x1425   :  { %1491 = vsyncpa [#allocation4], 1 }
0x1426   :  { %1492 = vsyncpa [#allocation7], 1 }
0x1427   :  { %1493 = vsyncpa [#allocation5], 1 }

</bundles_post_ra>
